<compile_context>
chip_gen: v5e
topology: v5e:2x2
jax: 0.10.0
libtpu: 0.0.40
codegen_flags: <defaults>
</compile_context>

<pallas_src>
import numpy as np
import jax
import jax.numpy as jnp
from jax import lax
from jax.experimental import pallas as pl
from jax.experimental.pallas import tpu as pltpu

H, W = 8, 7              # fixed by Linear(in_features=336) with 6 channels: 6*8*7
P = H * W                # 56 board positions per channel plane
KSZ = 5                  # conv kernel size, padding='same'
CS = 64                  # lane stride per channel plane (56 real + 8 zero-pad lanes)
B_TILE = 32              # batch rows per grid step
OUT_W = 256              # lane-dense output slab: [0,128) value, [128,256) policy


def _toeplitz_indices(cin, cout, in_stride, out_stride):
    """Scatter indices turning a 5x5 'same' conv into a (cin*in_stride, cout*out_stride) matmul."""
    co, ci, q, dh, dw = np.meshgrid(np.arange(cout), np.arange(cin), np.arange(P),
                                    np.arange(KSZ), np.arange(KSZ), indexing="ij")
    rq, cq = q // W, q % W
    ri, cj = rq + dh - 2, cq + dw - 2
    valid = (ri >= 0) & (ri < H) & (cj >= 0) & (cj < W)     # out-of-board taps read zero
    rows = (ci * in_stride + ri * W + cj)[valid]
    cols = (co * out_stride + q)[valid]
    widx = (((co * cin + ci) * KSZ + dh) * KSZ + dw)[valid]  # flat OIHW weight index
    return rows, cols, widx


# Precomputed once at module load (pure numpy, no per-call cost).
_IDX_C1 = _toeplitz_indices(2, 6, CS, CS)    # conv1  : (128, 384)
_IDX_C2 = _toeplitz_indices(6, 6, CS, CS)    # conv2  : (384, 384)
_IDX_P1 = _toeplitz_indices(6, 2, CS, CS)    # policy1: (384, 128)
_IDX_P2 = _toeplitz_indices(2, 1, CS, 128)   # policy2: (128, 128)


def _scatter_toeplitz(w, idx, shape):
    rows, cols, widx = idx
    vals = jnp.asarray(w, jnp.float32).reshape(-1)[widx]
    return jnp.zeros(shape, jnp.float32).at[rows, cols].set(vals)


def _bias_raster(b, cout, out_stride):
    cols = (np.arange(cout)[:, None] * out_stride + np.arange(P)[None, :]).reshape(-1)
    vals = jnp.repeat(jnp.asarray(b, jnp.float32), P)
    return jnp.zeros((1, cout * out_stride), jnp.float32).at[0, cols].set(vals)


def prepare_params(params):
    """One-time wrapper-side weight prep.  Cache the result; do NOT rebuild per call."""
    (wc1, bc1, wc2, bc2, w1, b1, w2, b2, wp1, bp1, wp2, bp2) = params
    t1 = _scatter_toeplitz(wc1, _IDX_C1, (2 * CS, 6 * CS))
    t2 = _scatter_toeplitz(wc2, _IDX_C2, (6 * CS, 6 * CS))
    tp1 = _scatter_toeplitz(wp1, _IDX_P1, (6 * CS, 2 * CS))
    tp2 = _scatter_toeplitz(wp2, _IDX_P2, (2 * CS, 128))
    bv1 = _bias_raster(bc1, 6, CS)
    bv2 = _bias_raster(bc2, 6, CS)
    bvp1 = _bias_raster(bp1, 2, CS)
    bvp2 = _bias_raster(bp2, 1, 128)
    # fc1: PyTorch flatten order is (c, h, w) -> row (c*CS + p) of the padded matrix.
    w1r = jnp.asarray(w1, jnp.float32).reshape(30, 6, P).transpose(1, 2, 0)      # (6, 56, 30)
    w1p = jnp.pad(w1r, ((0, 0), (0, CS - P), (0, 128 - 30))).reshape(6 * CS, 128)
    b1p = jnp.zeros((1, 128), jnp.float32).at[0, :30].set(jnp.asarray(b1, jnp.float32))
    w2p = jnp.zeros((128, 128), jnp.float32).at[:30, 0].set(jnp.asarray(w2, jnp.float32)[0])
    b2p = jnp.zeros((1, 128), jnp.float32).at[0, 0].set(jnp.asarray(b2, jnp.float32)[0])
    return (t1, bv1, t2, bv2, w1p, b1p, w2p, b2p, tp1, bvp1, tp2, bvp2)


def net_kernel(x_ref, t1, bv1, t2, bv2, w1p, b1p, w2p, b2p, tp1, bvp1, tp2, bvp2, out_ref):
    f32 = jnp.float32
    x = x_ref[...]                                                    # (B_TILE, 128)

    # ---- common trunk: Conv(2->6)+ReLU, Conv(6->6)+ReLU (block-Toeplitz MXU matmuls) ----
    h1 = jnp.maximum(jnp.dot(x, t1[...], preferred_element_type=f32) + bv1[...], 0.0)
    h2 = jnp.maximum(jnp.dot(h1, t2[...], preferred_element_type=f32) + bv2[...], 0.0)
    # Pad lanes (p >= 56 in each channel block) are exactly zero: Toeplitz columns and
    # bias raster are zero there, and downstream Toeplitz rows for them are zero too.

    # ---- value head: Flatten -> Linear(336,30) -> ReLU -> Linear(30,1) ----
    hid = jnp.maximum(jnp.dot(h2, w1p[...], preferred_element_type=f32) + b1p[...], 0.0)
    out_ref[:, 0:128] = jnp.dot(hid, w2p[...], preferred_element_type=f32) + b2p[...]

    # ---- policy head: Conv(6->2)+ReLU, Conv(2->1), spatial softmax ----
    p1 = jnp.maximum(jnp.dot(h2, tp1[...], preferred_element_type=f32) + bvp1[...], 0.0)
    plog = jnp.dot(p1, tp2[...], preferred_element_type=f32) + bvp2[...]   # (B_TILE, 128)
    lane = lax.broadcasted_iota(jnp.int32, plog.shape, 1)
    pexp = jnp.where(lane < P, jnp.exp(plog), 0.0)                    # pad lanes -> exact 0
    psum = jnp.sum(pexp, axis=1, keepdims=True)
    out_ref[:, 128:OUT_W] = pexp / psum                               # exact normalization


def net_forward(x, prepped):
    B = x.shape[0]
    B_pad = ((B + B_TILE - 1) // B_TILE) * B_TILE
    # Input layout: per channel, the 8x7 board flattened row-major into 56 lanes of a
    # 64-lane channel block (pad lanes zero).
    x_in = jnp.pad(x.astype(jnp.float32).reshape(B, 2, P),
                   ((0, B_pad - B), (0, 0), (0, CS - P))).reshape(B_pad, 2 * CS)

    (t1, bv1, t2, bv2, w1p, b1p, w2p, b2p, tp1, bvp1, tp2, bvp2) = prepped

    def resident(shape):          # whole array in VMEM, same block every grid step
        return pl.BlockSpec(shape, lambda i: (0,) * len(shape))

    call = pl.pallas_call(
        net_kernel,
        out_shape=jax.ShapeDtypeStruct((B_pad, OUT_W), jnp.float32),
        grid=(B_pad // B_TILE,),
        in_specs=[pl.BlockSpec((B_TILE, 2 * CS), lambda i: (i, 0)),   # x (channel-blocked)
                  resident(t1.shape), resident(bv1.shape),            # conv1
                  resident(t2.shape), resident(bv2.shape),            # conv2
                  resident(w1p.shape), resident(b1p.shape),           # fc1 (padded)
                  resident(w2p.shape), resident(b2p.shape),           # fc2 (padded)
                  resident(tp1.shape), resident(bvp1.shape),          # policy conv1
                  resident(tp2.shape), resident(bvp2.shape)],         # policy conv2
        out_specs=pl.BlockSpec((B_TILE, OUT_W), lambda i: (i, 0)),
        compiler_params=pltpu.CompilerParams(dimension_semantics=("parallel",)),
    )
    out = call(x_in, t1, bv1, t2, bv2, w1p, b1p, w2p, b2p, tp1, bvp1, tp2, bvp2)

    value = out[:B, 0:1]
    policy = out[:B, 128:128 + P].reshape(B, 1, H, W)
    return value, policy


def reference(x, params):
    """Plain-JAX reference matching the PyTorch forward."""
    (wc1, bc1, wc2, bc2, w1, b1, w2, b2, wp1, bp1, wp2, bp2) = params

    def conv(a, w, b):
        y = lax.conv_general_dilated(a, w, (1, 1), 'SAME',
                                     dimension_numbers=('NCHW', 'OIHW', 'NCHW'),
                                     precision=lax.Precision.HIGHEST)
        return y + b[None, :, None, None]

    h = jax.nn.relu(conv(x, wc1, bc1))
    h = jax.nn.relu(conv(h, wc2, bc2))                      # common
    flat = h.reshape(h.shape[0], -1)                        # PyTorch flatten (C,H,W order)
    hid = jax.nn.relu(jnp.dot(flat, w1.T, precision=lax.Precision.HIGHEST) + b1)
    value = jnp.dot(hid, w2.T, precision=lax.Precision.HIGHEST) + b2
    p = jax.nn.relu(conv(h, wp1, bp1))
    plog = conv(p, wp2, bp2)
    pexp = jnp.exp(plog)
    psum = jnp.sum(pexp, axis=(2, 3), keepdims=True)
    return value, pexp / psum


def make_params(key):
    """Deterministic init mimicking PyTorch defaults (U(-1/sqrt(fan_in), 1/sqrt(fan_in)))."""
    def u(k, shape, fan_in):
        bound = 1.0 / np.sqrt(fan_in)
        return jax.random.uniform(k, shape, jnp.float32, -bound, bound)

    ks = jax.random.split(key, 12)
    wc1 = u(ks[0], (6, 2, 5, 5), 2 * 25);   bc1 = u(ks[1], (6,), 2 * 25)
    wc2 = u(ks[2], (6, 6, 5, 5), 6 * 25);   bc2 = u(ks[3], (6,), 6 * 25)
    w1  = u(ks[4], (30, 336), 336);         b1  = u(ks[5], (30,), 336)
    w2  = u(ks[6], (1, 30), 30);            b2  = u(ks[7], (1,), 30)
    wp1 = u(ks[8], (2, 6, 5, 5), 6 * 25);   bp1 = u(ks[9], (2,), 6 * 25)
    wp2 = u(ks[10], (1, 2, 5, 5), 2 * 25);  bp2 = u(ks[11], (1,), 2 * 25)
    return (wc1, bc1, wc2, bc2, w1, b1, w2, b2, wp1, bp1, wp2, bp2)


if __name__ == "__main__":
    key = jax.random.PRNGKey(0)
    kx, kp = jax.random.split(key)
    params = make_params(kp)
    x = jax.random.normal(kx, (5, 2, H, W), jnp.float32)    # same shape family as the module's x

    prepped = prepare_params(params)                        # one-time cached weight prep
    fwd = jax.jit(net_forward)
    value_k, policy_k = fwd(x, prepped)
    jax.block_until_ready((value_k, policy_k))

    value_r, policy_r = reference(x, params)

    assert value_k.shape == (5, 1) and policy_k.shape == (5, 1, H, W)
    assert jnp.allclose(value_k, value_r, atol=2e-2, rtol=2e-2), (
        f"value mismatch: max abs diff {jnp.max(jnp.abs(value_k - value_r))}")
    assert jnp.allclose(policy_k, policy_r, atol=2e-3, rtol=1e-2), (
        f"policy mismatch: max abs diff {jnp.max(jnp.abs(policy_k - policy_r))}")

    print("KERNEL_OK")
</pallas_src>

<mosaic_0001>
module attributes {stable_mosaic.version = 11 : i64} {
  func.func @net_kernel(%arg0: i32, %arg1: memref<32x128xf32, #tpu.memory_space<vmem>>, %arg2: memref<128x384xf32, #tpu.memory_space<vmem>>, %arg3: memref<1x384xf32, #tpu.memory_space<vmem>>, %arg4: memref<384x384xf32, #tpu.memory_space<vmem>>, %arg5: memref<1x384xf32, #tpu.memory_space<vmem>>, %arg6: memref<384x128xf32, #tpu.memory_space<vmem>>, %arg7: memref<1x128xf32, #tpu.memory_space<vmem>>, %arg8: memref<128x128xf32, #tpu.memory_space<vmem>>, %arg9: memref<1x128xf32, #tpu.memory_space<vmem>>, %arg10: memref<384x128xf32, #tpu.memory_space<vmem>>, %arg11: memref<1x128xf32, #tpu.memory_space<vmem>>, %arg12: memref<128x128xf32, #tpu.memory_space<vmem>>, %arg13: memref<1x128xf32, #tpu.memory_space<vmem>>, %arg14: memref<32x256xf32, #tpu.memory_space<vmem>>) attributes {dimension_semantics = [#tpu.dimension_semantics<parallel>], iteration_bounds = array<i64: 1>, scalar_prefetch = 0 : i64, scratch_operands = 0 : i64, tpu.core_type = #tpu.core_type<tc>, window_params = [{transform_indices = @transform_0, window_bounds = array<i64: 32, 128>}, {pipeline_mode = #tpu.pipeline_mode<synchronous>, transform_indices = @transform_1, window_bounds = array<i64: 128, 384>}, {pipeline_mode = #tpu.pipeline_mode<synchronous>, transform_indices = @transform_2, window_bounds = array<i64: 1, 384>}, {pipeline_mode = #tpu.pipeline_mode<synchronous>, transform_indices = @transform_3, window_bounds = array<i64: 384, 384>}, {pipeline_mode = #tpu.pipeline_mode<synchronous>, transform_indices = @transform_4, window_bounds = array<i64: 1, 384>}, {pipeline_mode = #tpu.pipeline_mode<synchronous>, transform_indices = @transform_5, window_bounds = array<i64: 384, 128>}, {pipeline_mode = #tpu.pipeline_mode<synchronous>, transform_indices = @transform_6, window_bounds = array<i64: 1, 128>}, {pipeline_mode = #tpu.pipeline_mode<synchronous>, transform_indices = @transform_7, window_bounds = array<i64: 128, 128>}, {pipeline_mode = #tpu.pipeline_mode<synchronous>, transform_indices = @transform_8, window_bounds = array<i64: 1, 128>}, {pipeline_mode = #tpu.pipeline_mode<synchronous>, transform_indices = @transform_9, window_bounds = array<i64: 384, 128>}, {pipeline_mode = #tpu.pipeline_mode<synchronous>, transform_indices = @transform_10, window_bounds = array<i64: 1, 128>}, {pipeline_mode = #tpu.pipeline_mode<synchronous>, transform_indices = @transform_11, window_bounds = array<i64: 128, 128>}, {pipeline_mode = #tpu.pipeline_mode<synchronous>, transform_indices = @transform_12, window_bounds = array<i64: 1, 128>}, {transform_indices = @transform_13, window_bounds = array<i64: 32, 256>}]} {
    %c0 = arith.constant 0 : index
    %c0_0 = arith.constant 0 : index
    %0 = vector.load %arg1[%c0, %c0_0] : memref<32x128xf32, #tpu.memory_space<vmem>>, vector<32x128xf32>
    %c0_1 = arith.constant 0 : index
    %c0_2 = arith.constant 0 : index
    %1 = vector.load %arg2[%c0_1, %c0_2] : memref<128x384xf32, #tpu.memory_space<vmem>>, vector<128x384xf32>
    %cst = arith.constant dense<0.000000e+00> : vector<32x384xf32>
    %2 = tpu.matmul %0, %1, %cst {dimension_numbers = #tpu.dot_dimension_numbers<[1], [0], [0], [1], [0, 0, 1, 1], [], []>} : vector<32x128xf32>, vector<128x384xf32>, vector<32x384xf32> -> vector<32x384xf32>
    %c0_3 = arith.constant 0 : index
    %c0_4 = arith.constant 0 : index
    %3 = vector.load %arg3[%c0_3, %c0_4] : memref<1x384xf32, #tpu.memory_space<vmem>>, vector<1x384xf32>
    %4 = vector.broadcast %3 : vector<1x384xf32> to vector<32x384xf32>
    %5 = arith.addf %2, %4 : vector<32x384xf32>
    %cst_5 = arith.constant 0.000000e+00 : f32
    %6 = vector.broadcast %cst_5 : f32 to vector<32x384xf32>
    %7 = arith.maximumf %5, %6 : vector<32x384xf32>
    %c0_6 = arith.constant 0 : index
    %c0_7 = arith.constant 0 : index
    %8 = vector.load %arg4[%c0_6, %c0_7] : memref<384x384xf32, #tpu.memory_space<vmem>>, vector<384x384xf32>
    %cst_8 = arith.constant dense<0.000000e+00> : vector<32x384xf32>
    %9 = tpu.matmul %7, %8, %cst_8 {dimension_numbers = #tpu.dot_dimension_numbers<[1], [0], [0], [1], [0, 0, 1, 1], [], []>} : vector<32x384xf32>, vector<384x384xf32>, vector<32x384xf32> -> vector<32x384xf32>
    %c0_9 = arith.constant 0 : index
    %c0_10 = arith.constant 0 : index
    %10 = vector.load %arg5[%c0_9, %c0_10] : memref<1x384xf32, #tpu.memory_space<vmem>>, vector<1x384xf32>
    %11 = vector.broadcast %10 : vector<1x384xf32> to vector<32x384xf32>
    %12 = arith.addf %9, %11 : vector<32x384xf32>
    %cst_11 = arith.constant 0.000000e+00 : f32
    %13 = vector.broadcast %cst_11 : f32 to vector<32x384xf32>
    %14 = arith.maximumf %12, %13 : vector<32x384xf32>
    %c0_12 = arith.constant 0 : index
    %c0_13 = arith.constant 0 : index
    %15 = vector.load %arg6[%c0_12, %c0_13] : memref<384x128xf32, #tpu.memory_space<vmem>>, vector<384x128xf32>
    %cst_14 = arith.constant dense<0.000000e+00> : vector<32x128xf32>
    %16 = tpu.matmul %14, %15, %cst_14 {dimension_numbers = #tpu.dot_dimension_numbers<[1], [0], [0], [1], [0, 0, 1, 1], [], []>} : vector<32x384xf32>, vector<384x128xf32>, vector<32x128xf32> -> vector<32x128xf32>
    %c0_15 = arith.constant 0 : index
    %c0_16 = arith.constant 0 : index
    %17 = vector.load %arg7[%c0_15, %c0_16] : memref<1x128xf32, #tpu.memory_space<vmem>>, vector<1x128xf32>
    %18 = vector.broadcast %17 : vector<1x128xf32> to vector<32x128xf32>
    %19 = arith.addf %16, %18 : vector<32x128xf32>
    %cst_17 = arith.constant 0.000000e+00 : f32
    %20 = vector.broadcast %cst_17 : f32 to vector<32x128xf32>
    %21 = arith.maximumf %19, %20 : vector<32x128xf32>
    %c0_18 = arith.constant 0 : index
    %c0_19 = arith.constant 0 : index
    %22 = vector.load %arg8[%c0_18, %c0_19] : memref<128x128xf32, #tpu.memory_space<vmem>>, vector<128x128xf32>
    %cst_20 = arith.constant dense<0.000000e+00> : vector<32x128xf32>
    %23 = tpu.matmul %21, %22, %cst_20 {dimension_numbers = #tpu.dot_dimension_numbers<[1], [0], [0], [1], [0, 0, 1, 1], [], []>} : vector<32x128xf32>, vector<128x128xf32>, vector<32x128xf32> -> vector<32x128xf32>
    %c0_21 = arith.constant 0 : index
    %c0_22 = arith.constant 0 : index
    %24 = vector.load %arg9[%c0_21, %c0_22] : memref<1x128xf32, #tpu.memory_space<vmem>>, vector<1x128xf32>
    %25 = vector.broadcast %24 : vector<1x128xf32> to vector<32x128xf32>
    %26 = arith.addf %23, %25 : vector<32x128xf32>
    %c0_23 = arith.constant 0 : index
    %c0_24 = arith.constant 0 : index
    %27 = vector.load %arg14[%c0_23, %c0_24] : memref<32x256xf32, #tpu.memory_space<vmem>>, vector<32x128xf32>
    tpu.vector_store %arg14[%c0_23, %c0_24], %26 {strides = array<i32>} : memref<32x256xf32, #tpu.memory_space<vmem>>, vector<32x128xf32>,
    %c0_25 = arith.constant 0 : index
    %c0_26 = arith.constant 0 : index
    %28 = vector.load %arg10[%c0_25, %c0_26] : memref<384x128xf32, #tpu.memory_space<vmem>>, vector<384x128xf32>
    %cst_27 = arith.constant dense<0.000000e+00> : vector<32x128xf32>
    %29 = tpu.matmul %14, %28, %cst_27 {dimension_numbers = #tpu.dot_dimension_numbers<[1], [0], [0], [1], [0, 0, 1, 1], [], []>} : vector<32x384xf32>, vector<384x128xf32>, vector<32x128xf32> -> vector<32x128xf32>
    %c0_28 = arith.constant 0 : index
    %c0_29 = arith.constant 0 : index
    %30 = vector.load %arg11[%c0_28, %c0_29] : memref<1x128xf32, #tpu.memory_space<vmem>>, vector<1x128xf32>
    %31 = vector.broadcast %30 : vector<1x128xf32> to vector<32x128xf32>
    %32 = arith.addf %29, %31 : vector<32x128xf32>
    %cst_30 = arith.constant 0.000000e+00 : f32
    %33 = vector.broadcast %cst_30 : f32 to vector<32x128xf32>
    %34 = arith.maximumf %32, %33 : vector<32x128xf32>
    %c0_31 = arith.constant 0 : index
    %c0_32 = arith.constant 0 : index
    %35 = vector.load %arg12[%c0_31, %c0_32] : memref<128x128xf32, #tpu.memory_space<vmem>>, vector<128x128xf32>
    %cst_33 = arith.constant dense<0.000000e+00> : vector<32x128xf32>
    %36 = tpu.matmul %34, %35, %cst_33 {dimension_numbers = #tpu.dot_dimension_numbers<[1], [0], [0], [1], [0, 0, 1, 1], [], []>} : vector<32x128xf32>, vector<128x128xf32>, vector<32x128xf32> -> vector<32x128xf32>
    %c0_34 = arith.constant 0 : index
    %c0_35 = arith.constant 0 : index
    %37 = vector.load %arg13[%c0_34, %c0_35] : memref<1x128xf32, #tpu.memory_space<vmem>>, vector<1x128xf32>
    %38 = vector.broadcast %37 : vector<1x128xf32> to vector<32x128xf32>
    %39 = arith.addf %36, %38 : vector<32x128xf32>
    %40 = tpu.iota {dimensions = array<i32: 1>} : vector<32x128xi32>
    %c56_i32 = arith.constant 56 : i32
    %41 = vector.broadcast %c56_i32 : i32 to vector<32x128xi32>
    %42 = arith.cmpi slt, %40, %41 : vector<32x128xi32>
    %43 = math.exp %39 : vector<32x128xf32>
    %cst_36 = arith.constant 0.000000e+00 : f32
    %44 = vector.broadcast %cst_36 : f32 to vector<32x128xf32>
    %45 = arith.select %42, %43, %44 : vector<32x128xi1>, vector<32x128xf32>
    %cst_37 = arith.constant dense<0.000000e+00> : vector<32xf32>
    %46 = vector.multi_reduction <add>, %45, %cst_37 [1] : vector<32x128xf32> to vector<32xf32>
    %47 = vector.shape_cast %46 : vector<32xf32> to vector<32x1xf32>
    %48 = vector.broadcast %47 : vector<32x1xf32> to vector<32x128xf32>
    %49 = arith.divf %45, %48 : vector<32x128xf32>
    %c0_38 = arith.constant 0 : index
    %c128 = arith.constant 128 : index
    %50 = vector.load %arg14[%c0_38, %c128] : memref<32x256xf32, #tpu.memory_space<vmem>>, vector<32x128xf32>
    tpu.vector_store %arg14[%c0_38, %c128], %49 {strides = array<i32>} : memref<32x256xf32, #tpu.memory_space<vmem>>, vector<32x128xf32>,
    return
  }
  func.func @transform_0(%arg0: i32) -> (i32, i32) {
    %c0_i32 = arith.constant 0 : i32
    %c0_i32_0 = arith.constant 0 : i32
    return %arg0, %c0_i32 : i32, i32
  }
  func.func @transform_1(%arg0: i32) -> (i32, i32) {
    %c0_i32 = arith.constant 0 : i32
    %c0_i32_0 = arith.constant 0 : i32
    %c0_i32_1 = arith.constant 0 : i32
    return %c0_i32, %c0_i32_0 : i32, i32
  }
  func.func @transform_2(%arg0: i32) -> (i32, i32) {
    %c0_i32 = arith.constant 0 : i32
    %c0_i32_0 = arith.constant 0 : i32
    %c0_i32_1 = arith.constant 0 : i32
    return %c0_i32, %c0_i32_0 : i32, i32
  }
  func.func @transform_3(%arg0: i32) -> (i32, i32) {
    %c0_i32 = arith.constant 0 : i32
    %c0_i32_0 = arith.constant 0 : i32
    %c0_i32_1 = arith.constant 0 : i32
    return %c0_i32, %c0_i32_0 : i32, i32
  }
  func.func @transform_4(%arg0: i32) -> (i32, i32) {
    %c0_i32 = arith.constant 0 : i32
    %c0_i32_0 = arith.constant 0 : i32
    %c0_i32_1 = arith.constant 0 : i32
    return %c0_i32, %c0_i32_0 : i32, i32
  }
  func.func @transform_5(%arg0: i32) -> (i32, i32) {
    %c0_i32 = arith.constant 0 : i32
    %c0_i32_0 = arith.constant 0 : i32
    %c0_i32_1 = arith.constant 0 : i32
    return %c0_i32, %c0_i32_0 : i32, i32
  }
  func.func @transform_6(%arg0: i32) -> (i32, i32) {
    %c0_i32 = arith.constant 0 : i32
    %c0_i32_0 = arith.constant 0 : i32
    %c0_i32_1 = arith.constant 0 : i32
    return %c0_i32, %c0_i32_0 : i32, i32
  }
  func.func @transform_7(%arg0: i32) -> (i32, i32) {
    %c0_i32 = arith.constant 0 : i32
    %c0_i32_0 = arith.constant 0 : i32
    %c0_i32_1 = arith.constant 0 : i32
    return %c0_i32, %c0_i32_0 : i32, i32
  }
  func.func @transform_8(%arg0: i32) -> (i32, i32) {
    %c0_i32 = arith.constant 0 : i32
    %c0_i32_0 = arith.constant 0 : i32
    %c0_i32_1 = arith.constant 0 : i32
    return %c0_i32, %c0_i32_0 : i32, i32
  }
  func.func @transform_9(%arg0: i32) -> (i32, i32) {
    %c0_i32 = arith.constant 0 : i32
    %c0_i32_0 = arith.constant 0 : i32
    %c0_i32_1 = arith.constant 0 : i32
    return %c0_i32, %c0_i32_0 : i32, i32
  }
  func.func @transform_10(%arg0: i32) -> (i32, i32) {
    %c0_i32 = arith.constant 0 : i32
    %c0_i32_0 = arith.constant 0 : i32
    %c0_i32_1 = arith.constant 0 : i32
    return %c0_i32, %c0_i32_0 : i32, i32
  }
  func.func @transform_11(%arg0: i32) -> (i32, i32) {
    %c0_i32 = arith.constant 0 : i32
    %c0_i32_0 = arith.constant 0 : i32
    %c0_i32_1 = arith.constant 0 : i32
    return %c0_i32, %c0_i32_0 : i32, i32
  }
  func.func @transform_12(%arg0: i32) -> (i32, i32) {
    %c0_i32 = arith.constant 0 : i32
    %c0_i32_0 = arith.constant 0 : i32
    %c0_i32_1 = arith.constant 0 : i32
    return %c0_i32, %c0_i32_0 : i32, i32
  }
  func.func @transform_13(%arg0: i32) -> (i32, i32) {
    %c0_i32 = arith.constant 0 : i32
    %c0_i32_0 = arith.constant 0 : i32
    return %arg0, %c0_i32 : i32, i32
  }
}

</mosaic_0001>

<bundles_post_ra>
// kernel: net_forward.1
= control target key start
LH: loop header
LB: loop body
LE: loop exit
PB: predicated region body
PF: predicated region fallthrough
CT: control target
= control target key end

     0   :  { %18 = vsyncpa [#allocation3], 0  ;;  %s1766_s0 = inlined_call_operand.vmem [shape: f32[32,128], index: 0, kind: input, shape index: {}]   ;;  %s1767_s1 = inlined_call_operand.vmem [shape: f32[128,384], index: 1, kind: input, shape index: {}]   ;;  %s1768_s2 = inlined_call_operand.vmem [shape: f32[1,384], index: 2, kind: input, shape index: {}]   ;;  %s1769_s3 = inlined_call_operand.hbm [shape: f32[384,384], index: 3, kind: input, shape index: {}]   ;;  %s1770_s4 = inlined_call_operand.vmem [shape: f32[1,384], index: 4, kind: input, shape index: {}]   ;;  %s1771_s5 = inlined_call_operand.hbm [shape: f32[384,128], index: 5, kind: input, shape index: {}]   ;;  %s1772_s6 = inlined_call_operand.vmem [shape: f32[1,128], index: 6, kind: input, shape index: {}]   ;;  %s1773_s7 = inlined_call_operand.hbm [shape: f32[128,128], index: 7, kind: input, shape index: {}]   ;;  %s1774_s8 = inlined_call_operand.vmem [shape: f32[1,128], index: 8, kind: input, shape index: {}]   ;;  %s1775_s9 = inlined_call_operand.hbm [shape: f32[384,128], index: 9, kind: input, shape index: {}]   ;;  %s1776_s10 = inlined_call_operand.vmem [shape: f32[1,128], index: 10, kind: input, shape index: {}]   ;;  %s1777_s11 = inlined_call_operand.hbm [shape: f32[128,128], index: 11, kind: input, shape index: {}]   ;;  %s1778_s12 = inlined_call_operand.vmem [shape: f32[1,128], index: 12, kind: input, shape index: {}]   ;;  %s1779_s13 = inlined_call_operand.vmem [shape: f32[32,256], index: 13, kind: output, shape index: {}]  }
   0x1   :  { %19 = vsyncpa [#allocation5], 0  ;;  %s46_s27 = sshll.u32 %s1771_s5, 4  ;;  %s47_s27 = int_to_ptr.hbm [resolvable:$true] %s46_s27 }
   0x2   :  { %20 = vsyncpa [#allocation8], 0  ;;  %s1343_s28 = smov [#allocation4]   ;;  %s76_s15 = sshll.u32 %s1775_s9, 4  ;;  %s77_s15 = int_to_ptr.hbm [resolvable:$true] %s76_s15 }
   0x3   :  { %s48_s29 = sshll.u32 %s1343_s28, 4  ;;  %s1344_s16 = smov 128   ;;  %s49_s29 = int_to_ptr.vmem [resolvable:$true] %s48_s29 }
   0x4   :  { %s1345_s17 = smov 8   ;;  %s1346_s18 = smov [#allocation7]  }
   0x5   :  { %54 = dma.hbm_to_vmem [thread:$0]  %s47_s27, 6144, %s49_s29, [#allocation5], %s1344_s16, %s1344_s16, %s1345_s17  }
   0x6   :  { %s78_s19 = sshll.u32 %s1346_s18, 4  ;;  %s31_s21 = sshll.u32 %s1769_s3, 4  ;;  %s79_s19 = int_to_ptr.vmem [resolvable:$true] %s78_s19  ;;  %s32_s21 = int_to_ptr.hbm [resolvable:$true] %s31_s21 }
   0x7   :  { %84 = dma.hbm_to_vmem [thread:$0]  %s77_s15, 6144, %s79_s19, [#allocation8], %s1344_s16, %s1344_s16, %s1345_s17  }
   0x8   :  { %s1347_s9 = smov [#allocation2]   ;;  %s61_s25 = sshll.u32 %s1773_s7, 4  ;;  %s62_s25 = int_to_ptr.hbm [resolvable:$true] %s61_s25 }
   0x9   :  { %s33_s22 = sshll.u32 %s1347_s9, 4  ;;  %s1348_s26 = smov 384   ;;  %s34_s22 = int_to_ptr.vmem [resolvable:$true] %s33_s22 }
   0xa   :  { %s1349_s27 = smov 24   ;;  %s1350_s28 = smov [#allocation6]  }
   0xb   :  { %39 = dma.hbm_to_vmem [thread:$0]  %s32_s21, 18432, %s34_s22, [#allocation3], %s1348_s26, %s1348_s26, %s1349_s27  }
   0xc   :  { %s63_s29 = sshll.u32 %s1350_s28, 4  ;;  %s91_s14 = sshll.u32 %s1777_s11, 4  ;;  %s64_s29 = int_to_ptr.vmem [resolvable:$true] %s63_s29  ;;  %s92_s14 = int_to_ptr.hbm [resolvable:$true] %s91_s14 }
   0xd   :  { %69 = dma.hbm_to_vmem [thread:$0]  %s62_s25, 2048, %s64_s29, [#allocation5], %s1344_s16, %s1344_s16, %s1345_s17  }
   0xe   :  { %s1351_s15 = smov [#allocation9]  }
   0xf   :  { %s93_s18 = sshll.u32 %s1351_s15, 4  ;;  %s94_s18 = int_to_ptr.vmem [resolvable:$true] %s93_s18 }
  0x10   :  { %99 = dma.hbm_to_vmem [thread:$0]  %s92_s14, 2048, %s94_s18, [#allocation8], %s1344_s16, %s1344_s16, %s1345_s17  }
  0x11   :  { %1337 = dma.done.wait [#allocation3], 18432  }
  0x12   :  { %1338 = vsyncadd [#allocation3], 4294948864 }
  0x13   :  { %1339 = dma.done.wait [#allocation5], 8192  }
  0x14   :  { %1340 = vsyncadd [#allocation5], 4294959104 }
  0x15   :  { %1341 = dma.done.wait [#allocation8], 8192  }
  0x16   :  { %1342 = vsyncadd [#allocation8], 4294959104  ;;  %v171_v0 = vld [vmem:[%s1767_s1 + $0x168] sm:$0xff]  ;;  %v173_v1 = vld [vmem:[%s1767_s1 + $0x178] sm:$0xff] }
  0x17   :  { %v168_v2 = vld [vmem:[%s1767_s1 + $0x150] sm:$0xff]  ;;  %182 = vmatpush.msra.mxu0 %v171_v0  ;;  %240 = vmatpush.msra.mxu2 %v173_v1  ;;  %v170_v4 = vld [vmem:[%s1767_s1 + $0x160] sm:$0xff]  ;;  %v165_v5 = vld [vmem:[%s1767_s1 + $0x138] sm:$0xff] }
  0x18   :  { %v172_v3 = vld [vmem:[%s1767_s1 + $0x170] sm:$0xff]  ;;  %v169_v6 = vld [vmem:[%s1767_s1 + $0x158] sm:$0xff]  ;;  %v167_v7 = vld [vmem:[%s1767_s1 + $0x148] sm:$0xff] }
  0x19   :  { %211 = vmatpush.msra.mxu1 %v172_v3  ;;  %183 = vmatpush.msra.mxu0 %v168_v2  ;;  %v166_v8 = vld [vmem:[%s1767_s1 + $0x140] sm:$0xff]  ;;  %v164_v10 = vld [vmem:[%s1767_s1 + $0x130] sm:$0xff]  ;;  %v163_v11 = vld [vmem:[%s1767_s1 + $0x128] sm:$0xff] }
  0x1a   :  { %241 = vmatpush.msra.mxu2 %v170_v4  ;;  %v162_v9 = vld [vmem:[%s1767_s1 + $0x120] sm:$0xff]  ;;  %v159_v12 = vld [vmem:[%s1767_s1 + $0x108] sm:$0xff]  ;;  %v161_v13 = vld [vmem:[%s1767_s1 + $0x118] sm:$0xff] }
  0x1b   :  { %212 = vmatpush.msra.mxu1 %v169_v6  ;;  %184 = vmatpush.msra.mxu0 %v165_v5  ;;  %v160_v14 = vld [vmem:[%s1767_s1 + $0x110] sm:$0xff]  ;;  %v158_v16 = vld [vmem:[%s1767_s1 + $0x100] sm:$0xff]  ;;  %v157_v17 = vld [vmem:[%s1767_s1 + $0xf8] sm:$0xff] }
  0x1c   :  { %242 = vmatpush.msra.mxu2 %v167_v7  ;;  %v156_v15 = vld [vmem:[%s1767_s1 + $0xf0] sm:$0xff]  ;;  %v153_v18 = vld [vmem:[%s1767_s1 + $0xd8] sm:$0xff]  ;;  %v155_v19 = vld [vmem:[%s1767_s1 + $0xe8] sm:$0xff] }
  0x1d   :  { %213 = vmatpush.msra.mxu1 %v166_v8  ;;  %185 = vmatpush.msra.mxu0 %v162_v9  ;;  %v154_v20 = vld [vmem:[%s1767_s1 + $0xe0] sm:$0xff]  ;;  %v152_v22 = vld [vmem:[%s1767_s1 + $0xd0] sm:$0xff]  ;;  %v151_v23 = vld [vmem:[%s1767_s1 + $0xc8] sm:$0xff] }
  0x1e   :  { %243 = vmatpush.msra.mxu2 %v164_v10  ;;  %v150_v21 = vld [vmem:[%s1767_s1 + $0xc0] sm:$0xff]  ;;  %v147_v24 = vld [vmem:[%s1767_s1 + $0xa8] sm:$0xff]  ;;  %v149_v25 = vld [vmem:[%s1767_s1 + $0xb8] sm:$0xff] }
  0x1f   :  { %214 = vmatpush.msra.mxu1 %v163_v11  ;;  %186 = vmatpush.msra.mxu0 %v159_v12  ;;  %v148_v26 = vld [vmem:[%s1767_s1 + $0xb0] sm:$0xff]  ;;  %v146_v28 = vld [vmem:[%s1767_s1 + $0xa0] sm:$0xff]  ;;  %v145_v29 = vld [vmem:[%s1767_s1 + $0x98] sm:$0xff] }
  0x20   :  { %244 = vmatpush.msra.mxu2 %v161_v13  ;;  %v144_v27 = vld [vmem:[%s1767_s1 + $0x90] sm:$0xff]  ;;  %v141_v30 = vld [vmem:[%s1767_s1 + $0x78] sm:$0xff]  ;;  %v143_v31 = vld [vmem:[%s1767_s1 + $0x88] sm:$0xff] }
  0x21   :  { %215 = vmatpush.msra.mxu1 %v160_v14  ;;  %187 = vmatpush.msra.mxu0 %v156_v15  ;;  %v142_v32 = vld [vmem:[%s1767_s1 + $0x80] sm:$0xff]  ;;  %v140_v34 = vld [vmem:[%s1767_s1 + $0x70] sm:$0xff]  ;;  %v139_v35 = vld [vmem:[%s1767_s1 + $0x68] sm:$0xff] }
  0x22   :  { %245 = vmatpush.msra.mxu2 %v158_v16  ;;  %v138_v33 = vld [vmem:[%s1767_s1 + $0x60] sm:$0xff]  ;;  %v135_v36 = vld [vmem:[%s1767_s1 + $0x48] sm:$0xff]  ;;  %v137_v37 = vld [vmem:[%s1767_s1 + $0x58] sm:$0xff] }
  0x23   :  { %216 = vmatpush.msra.mxu1 %v157_v17  ;;  %188 = vmatpush.msra.mxu0 %v153_v18  ;;  %v136_v38 = vld [vmem:[%s1767_s1 + $0x50] sm:$0xff]  ;;  %v134_v40 = vld [vmem:[%s1767_s1 + $0x40] sm:$0xff]  ;;  %v133_v41 = vld [vmem:[%s1767_s1 + $0x38] sm:$0xff] }
  0x24   :  { %246 = vmatpush.msra.mxu2 %v155_v19  ;;  %v132_v39 = vld [vmem:[%s1767_s1 + $0x30] sm:$0xff]  ;;  %v129_v42 = vld [vmem:[%s1767_s1 + $0x18] sm:$0xff]  ;;  %v131_v43 = vld [vmem:[%s1767_s1 + $0x28] sm:$0xff] }
  0x25   :  { %217 = vmatpush.msra.mxu1 %v154_v20  ;;  %189 = vmatpush.msra.mxu0 %v150_v21  ;;  %v326_v44 = vld [vmem:[#allocation2 + $0x168] sm:$0xff]  ;;  %v130_v45 = vld [vmem:[%s1767_s1 + $0x20] sm:$0xff]  ;;  %v323_v46 = vld [vmem:[#allocation2 + $0x150] sm:$0xff] }
  0x26   :  { %247 = vmatpush.msra.mxu2 %v152_v22  ;;  %v126_v47 = vld [vmem:[%s1767_s1] sm:$0xff]  ;;  %v128_v48 = vld [vmem:[%s1767_s1 + $0x10] sm:$0xff]  ;;  %433 = vmatpush.msra.mxu3 %v326_v44  ;;  %v127_v50 = vld [vmem:[%s1767_s1 + $0x8] sm:$0xff] }
  0x27   :  { %218 = vmatpush.msra.mxu1 %v151_v23  ;;  %190 = vmatpush.msra.mxu0 %v147_v24  ;;  %v122_v49 = vld [vmem:[%s1766_s0] sm:$0xff]  ;;  %v327_v51 = vld [vmem:[#allocation2 + $0x170] sm:$0xff]  ;;  %v374_v52 = vld [vmem:[#allocation2 + $0x2e8] sm:$0xff] }
  0x28   :  { %248 = vmatpush.msra.mxu2 %v149_v25  ;;  %434 = vmatpush.msra.mxu3 %v323_v46  ;;  %v324_v53 = vld [vmem:[#allocation2 + $0x158] sm:$0xff]  ;;  %v371_v55 = vld [vmem:[#allocation2 + $0x2d0] sm:$0xff]  ;;  %v422_v56 = vld [vmem:[#allocation2 + $0x468] sm:$0xff] }
  0x29   :  { %219 = vmatpush.msra.mxu1 %v148_v26  ;;  %191 = vmatpush.msra.mxu0 %v144_v27  ;;  %v320_v54 = vld [vmem:[#allocation2 + $0x138] sm:$0xff]  ;;  %v321_v57 = vld [vmem:[#allocation2 + $0x140] sm:$0xff]  ;;  %v419_v60 = vld [vmem:[#allocation2 + $0x450] sm:$0xff] }
  0x2a   :  { %249 = vmatpush.msra.mxu2 %v146_v28  ;;  %v317_v58 = vld [vmem:[#allocation2 + $0x120] sm:$0xff]  ;;  %435 = vmatpush.msra.mxu3 %v320_v54  ;;  %v368_v59 = vld [vmem:[#allocation2 + $0x2b8] sm:$0xff]  ;;  %v318_v61 = vld [vmem:[#allocation2 + $0x128] sm:$0xff] }
  0x2b   :  { %220 = vmatpush.msra.mxu1 %v145_v29  ;;  %192 = vmatpush.msra.mxu0 %v141_v30  ;;  %v314_v62 = vld [vmem:[#allocation2 + $0x108] sm:$0xff]  ;;  %v365_v0 = vld [vmem:[#allocation2 + $0x2a0] sm:$0xff]  ;;  %v315_v1 = vld [vmem:[#allocation2 + $0x110] sm:$0xff] }
  0x2c   :  { %250 = vmatpush.msra.mxu2 %v143_v31  ;;  %v123_v63 = vld [vmem:[%s1766_s0 + $0x8] sm:$0xff]  ;;  %436 = vmatpush.msra.mxu3 %v317_v58  ;;  %v311_v2 = vld [vmem:[#allocation2 + $0xf0] sm:$0xff]  ;;  %v416_v4 = vld [vmem:[#allocation2 + $0x438] sm:$0xff] }
  0x2d   :  { %221 = vmatpush.msra.mxu1 %v142_v32  ;;  %193 = vmatpush.msra.mxu0 %v138_v33  ;;  %v362_v3 = vld [vmem:[#allocation2 + $0x288] sm:$0xff]  ;;  %v312_v5 = vld [vmem:[#allocation2 + $0xf8] sm:$0xff]  ;;  %v359_v7 = vld [vmem:[#allocation2 + $0x270] sm:$0xff] }
  0x2e   :  { %251 = vmatpush.msra.mxu2 %v140_v34  ;;  %437 = vmatpush.msra.mxu3 %v314_v62  ;;  %v308_v6 = vld [vmem:[#allocation2 + $0xd8] sm:$0xff]  ;;  %v413_v8 = vld [vmem:[#allocation2 + $0x420] sm:$0xff]  ;;  %v410_v12 = vld [vmem:[#allocation2 + $0x408] sm:$0xff] }
  0x2f   :  { %222 = vmatpush.msra.mxu1 %v139_v35  ;;  %194 = vmatpush.msra.mxu0 %v135_v36  ;;  %v309_v9 = vld [vmem:[#allocation2 + $0xe0] sm:$0xff]  ;;  %v356_v11 = vld [vmem:[#allocation2 + $0x258] sm:$0xff]  ;;  %v124_v13 = vld [vmem:[%s1766_s0 + $0x10] sm:$0xff] }
  0x30   :  { %252 = vmatpush.msra.mxu2 %v137_v37  ;;  %438 = vmatpush.msra.mxu3 %v311_v2  ;;  %v305_v10 = vld [vmem:[#allocation2 + $0xc0] sm:$0xff]  ;;  %v306_v14 = vld [vmem:[#allocation2 + $0xc8] sm:$0xff]  ;;  %v407_v17 = vld [vmem:[#allocation2 + $0x3f0] sm:$0xff] }
  0x31   :  { %223 = vmatpush.msra.mxu1 %v136_v38  ;;  %195 = vmatpush.msra.mxu0 %v132_v39  ;;  %v302_v15 = vld [vmem:[#allocation2 + $0xa8] sm:$0xff]  ;;  %v353_v16 = vld [vmem:[#allocation2 + $0x240] sm:$0xff]  ;;  %v303_v18 = vld [vmem:[#allocation2 + $0xb0] sm:$0xff] }
  0x32   :  { %253 = vmatpush.msra.mxu2 %v134_v40  ;;  %439 = vmatpush.msra.mxu3 %v308_v6  ;;  %v299_v19 = vld [vmem:[#allocation2 + $0x90] sm:$0xff]  ;;  %v350_v20 = vld [vmem:[#allocation2 + $0x228] sm:$0xff]  ;;  %v404_v21 = vld [vmem:[#allocation2 + $0x3d8] sm:$0xff] }
  0x33   :  { %224 = vmatpush.msra.mxu1 %v133_v41  ;;  %196 = vmatpush.msra.mxu0 %v129_v42  ;;  %v300_v22 = vld [vmem:[#allocation2 + $0x98] sm:$0xff]  ;;  %v347_v24 = vld [vmem:[#allocation2 + $0x210] sm:$0xff]  ;;  %v401_v25 = vld [vmem:[#allocation2 + $0x3c0] sm:$0xff] }
  0x34   :  { %254 = vmatpush.msra.mxu2 %v131_v43  ;;  %440 = vmatpush.msra.mxu3 %v305_v10  ;;  %v296_v23 = vld [vmem:[#allocation2 + $0x78] sm:$0xff]  ;;  %v297_v26 = vld [vmem:[#allocation2 + $0x80] sm:$0xff]  ;;  %v294_v30 = vld [vmem:[#allocation2 + $0x68] sm:$0xff] }
  0x35   :  { %225 = vmatpush.msra.mxu1 %v130_v45  ;;  %197 = vmatpush.msra.mxu0 %v126_v47  ;;  %v125_v27 = vld [vmem:[%s1766_s0 + $0x18] sm:$0xff]  ;;  %v293_v28 = vld [vmem:[#allocation2 + $0x60] sm:$0xff]  ;;  %v398_v31 = vld [vmem:[#allocation2 + $0x3a8] sm:$0xff] }
  0x36   :  { %255 = vmatpush.msra.mxu2 %v128_v48  ;;  %198 = vmatmul.f32.vlgmr.msra.gmra.mxu0 %v122_v49  ;;  %v344_v29 = vld [vmem:[#allocation2 + $0x1f8] sm:$0xff]  ;;  %v290_v32 = vld [vmem:[#allocation2 + $0x48] sm:$0xff]  ;;  %v341_v33 = vld [vmem:[#allocation2 + $0x1e0] sm:$0xff] }
  0x37   :  { %256 = vmatmul.f32.vlgmr.msra.gmra.mxu2 %v122_v49  ;;  %226 = vmatpush.msra.mxu1 %v127_v50  ;;  %v291_v34 = vld [vmem:[#allocation2 + $0x50] sm:$0xff]  ;;  %v338_v37 = vld [vmem:[#allocation2 + $0x1c8] sm:$0xff]  ;;  %v392_v38 = vld [vmem:[#allocation2 + $0x378] sm:$0xff] }
  0x38   :  { %520 = vmatpush.msrb.mxu2 %v327_v51  ;;  %227 = vmatmul.f32.vlgmr.msra.gmra.mxu1 %v122_v49  ;;  %v395_v35 = vld [vmem:[#allocation2 + $0x390] sm:$0xff]  ;;  %v288_v39 = vld [vmem:[#allocation2 + $0x38] sm:$0xff]  ;;  %v389_v42 = vld [vmem:[#allocation2 + $0x360] sm:$0xff] }
  0x39   :  { %462 = vmatpush.msrb.mxu0 %v374_v52  ;;  %491 = vmatpush.msrb.mxu1 %v422_v56  ;;  %v287_v36 = vld [vmem:[#allocation2 + $0x30] sm:$0xff]  ;;  %v284_v40 = vld [vmem:[#allocation2 + $0x18] sm:$0xff]  ;;  %v285_v43 = vld [vmem:[#allocation2 + $0x20] sm:$0xff] }
  0x3a   :  { %521 = vmatpush.msrb.mxu2 %v324_v53  ;;  %441 = vmatpush.msra.mxu3 %v302_v15  ;;  %v335_v41 = vld [vmem:[#allocation2 + $0x1b0] sm:$0xff]  ;;  %v281_v44 = vld [vmem:[#allocation2] sm:$0xff]  ;;  %v332_v45 = vld [vmem:[#allocation2 + $0x198] sm:$0xff] }
  0x3b   :  { %463 = vmatpush.msrb.mxu0 %v371_v55  ;;  %492 = vmatpush.msrb.mxu1 %v419_v60  ;;  %v386_v46 = vld [vmem:[#allocation2 + $0x348] sm:$0xff]  ;;  %v375_v48 = vld [vmem:[#allocation2 + $0x2f0] sm:$0xff]  ;;  %v329_v49 = vld [vmem:[#allocation2 + $0x180] sm:$0xff] }
  0x3c   :  { %522 = vmatpush.msrb.mxu2 %v321_v57  ;;  %442 = vmatpush.msra.mxu3 %v299_v19  ;;  %v282_v47 = vld [vmem:[#allocation2 + $0x8] sm:$0xff]  ;;  %v383_v50 = vld [vmem:[#allocation2 + $0x330] sm:$0xff]  ;;  %v376_v51 = vld [vmem:[#allocation2 + $0x2f8] sm:$0xff] }
  0x3d   :  { %464 = vmatpush.msrb.mxu0 %v368_v59  ;;  %493 = vmatpush.msrb.mxu1 %v416_v4  ;;  %v372_v52 = vld [vmem:[#allocation2 + $0x2d8] sm:$0xff]  ;;  %v423_v54 = vld [vmem:[#allocation2 + $0x470] sm:$0xff]  ;;  %v373_v55 = vld [vmem:[#allocation2 + $0x2e0] sm:$0xff] }
  0x3e   :  { %523 = vmatpush.msrb.mxu2 %v318_v61  ;;  %201 = vmatmul.f32.gmra.mxu0 %v123_v63  ;;  %v380_v53 = vld [vmem:[#allocation2 + $0x318] sm:$0xff]  ;;  %v369_v56 = vld [vmem:[#allocation2 + $0x2c0] sm:$0xff]  ;;  %v370_v59 = vld [vmem:[#allocation2 + $0x2c8] sm:$0xff] }
  0x3f   :  { %259 = vmatmul.f32.gmra.mxu2 %v123_v63  ;;  %465 = vmatpush.msrb.mxu0 %v365_v0  ;;  %v377_v57 = vld [vmem:[#allocation2 + $0x300] sm:$0xff]  ;;  %v420_v58 = vld [vmem:[#allocation2 + $0x458] sm:$0xff]  ;;  %v366_v60 = vld [vmem:[#allocation2 + $0x2a8] sm:$0xff] }
  0x40   :  { %524 = vmatpush.msrb.mxu2 %v315_v1  ;;  %230 = vmatmul.f32.gmra.mxu1 %v123_v63  ;;  %v417_v61 = vld [vmem:[#allocation2 + $0x440] sm:$0xff]  ;;  %v328_v62 = vld [vmem:[#allocation2 + $0x178] sm:$0xff]  ;;  %v367_v63 = vld [vmem:[#allocation2 + $0x2b0] sm:$0xff] }
  0x41   :  { %466 = vmatpush.msrb.mxu0 %v362_v3  ;;  %494 = vmatpush.msrb.mxu1 %v413_v8  ;;  %v363_v0 = vld [vmem:[#allocation2 + $0x290] sm:$0xff]  ;;  %v414_v1 = vld [vmem:[#allocation2 + $0x428] sm:$0xff]  ;;  %v325_v2 = vld [vmem:[#allocation2 + $0x160] sm:$0xff] }
  0x42   :  { %525 = vmatpush.msrb.mxu2 %v312_v5  ;;  %443 = vmatpush.msra.mxu3 %v296_v23  ;;  %v364_v3 = vld [vmem:[#allocation2 + $0x298] sm:$0xff]  ;;  %v411_v5 = vld [vmem:[#allocation2 + $0x410] sm:$0xff]  ;;  %v322_v6 = vld [vmem:[#allocation2 + $0x148] sm:$0xff] }
  0x43   :  { %467 = vmatpush.msrb.mxu0 %v359_v7  ;;  %495 = vmatpush.msrb.mxu1 %v410_v12  ;;  %v360_v4 = vld [vmem:[#allocation2 + $0x278] sm:$0xff]  ;;  %v361_v7 = vld [vmem:[#allocation2 + $0x280] sm:$0xff]  ;;  %v319_v10 = vld [vmem:[#allocation2 + $0x130] sm:$0xff] }
  0x44   :  { %526 = vmatpush.msrb.mxu2 %v309_v9  ;;  %444 = vmatpush.msra.mxu3 %v293_v28  ;;  %v357_v8 = vld [vmem:[#allocation2 + $0x260] sm:$0xff]  ;;  %v408_v9 = vld [vmem:[#allocation2 + $0x3f8] sm:$0xff]  ;;  %v354_v12 = vld [vmem:[#allocation2 + $0x248] sm:$0xff] }
  0x45   :  { %468 = vmatpush.msrb.mxu0 %v356_v11  ;;  %496 = vmatpush.msrb.mxu1 %v407_v17  ;;  %v358_v11 = vld [vmem:[#allocation2 + $0x268] sm:$0xff]  ;;  %v355_v15 = vld [vmem:[#allocation2 + $0x250] sm:$0xff]  ;;  %v352_v19 = vld [vmem:[#allocation2 + $0x238] sm:$0xff] }
  0x46   :  { %204 = vmatmul.f32.gmra.mxu0 %v124_v13  ;;  %527 = vmatpush.msrb.mxu2 %v306_v14  ;;  %v316_v14 = vld [vmem:[#allocation2 + $0x118] sm:$0xff]  ;;  %v402_v17 = vld [vmem:[#allocation2 + $0x3c8] sm:$0xff]  ;;  %v349_v23 = vld [vmem:[#allocation2 + $0x220] sm:$0xff] }
  0x47   :  { %262 = vmatmul.f32.gmra.mxu2 %v124_v13  ;;  %469 = vmatpush.msrb.mxu0 %v353_v16  ;;  %v351_v16 = vld [vmem:[#allocation2 + $0x230] sm:$0xff]  ;;  %v346_v28 = vld [vmem:[#allocation2 + $0x208] sm:$0xff] }
  0x48   :  { %233 = vmatmul.f32.gmra.mxu1 %v124_v13  ;;  %528 = vmatpush.msrb.mxu2 %v303_v18  ;;  %v405_v13 = vld [vmem:[#allocation2 + $0x3e0] sm:$0xff] }
  0x49   :  { %470 = vmatpush.msrb.mxu0 %v350_v20  ;;  %497 = vmatpush.msrb.mxu1 %v404_v21  ;;  %v313_v18 = vld [vmem:[#allocation2 + $0x100] sm:$0xff]  ;;  %v348_v20 = vld [vmem:[#allocation2 + $0x218] sm:$0xff]  ;;  %v399_v21 = vld [vmem:[#allocation2 + $0x3b0] sm:$0xff] }
  0x4a   :  { %529 = vmatpush.msrb.mxu2 %v300_v22  ;;  %445 = vmatpush.msra.mxu3 %v290_v32  ;;  %v310_v22 = vld [vmem:[#allocation2 + $0xe8] sm:$0xff]  ;;  %v343_v32 = vld [vmem:[#allocation2 + $0x1f0] sm:$0xff] }
  0x4b   :  { %471 = vmatpush.msrb.mxu0 %v347_v24  ;;  %498 = vmatpush.msrb.mxu1 %v401_v25  ;;  %v345_v24 = vld [vmem:[#allocation2 + $0x200] sm:$0xff]  ;;  %v396_v25 = vld [vmem:[#allocation2 + $0x398] sm:$0xff] }
  0x4c   :  { %530 = vmatpush.msrb.mxu2 %v297_v26  ;;  %446 = vmatpush.msra.mxu3 %v287_v36  ;;  %v307_v26 = vld [vmem:[#allocation2 + $0xd0] sm:$0xff]  ;;  %v301_v36 = vld [vmem:[#allocation2 + $0xa0] sm:$0xff] }
  0x4d   :  { %472 = vmatpush.msrb.mxu0 %v344_v29  ;;  %499 = vmatpush.msrb.mxu1 %v398_v31  ;;  %v342_v29 = vld [vmem:[#allocation2 + $0x1e8] sm:$0xff]  ;;  %v304_v31 = vld [vmem:[#allocation2 + $0xb8] sm:$0xff] }
  0x4e   :  { %207 = vmatmul.f32.gmra.mxu0 %v125_v27  ;;  %531 = vmatpush.msrb.mxu2 %v294_v30  ;;  %v393_v30 = vld [vmem:[#allocation2 + $0x380] sm:$0xff] }
  0x4f   :  { %265 = vmatmul.f32.gmra.mxu2 %v125_v27  ;;  %473 = vmatpush.msrb.mxu0 %v341_v33 }
  0x50   :  { %236 = vmatmul.f32.gmra.mxu1 %v125_v27  ;;  %532 = vmatpush.msrb.mxu2 %v291_v34  ;;  %v174_v27 = vld [vmem:[%s1768_s2] sm:$0x7]  ;;  %v339_v34 = vld [vmem:[#allocation2 + $0x1d0] sm:$0xff] }
  0x51   :  { %500 = vmatpush.msrb.mxu1 %v395_v35  ;;  %474 = vmatpush.msrb.mxu0 %v338_v37  ;;  %v1608_v33 = vperm.slane %v174_v27, 0  ;;  %v390_v35 = vld [vmem:[#allocation2 + $0x368] sm:$0xff]  ;;  %v340_v37 = vld [vmem:[#allocation2 + $0x1d8] sm:$0xff] }
  0x52   :  { %533 = vmatpush.msrb.mxu2 %v288_v39  ;;  %447 = vmatpush.msra.mxu3 %v284_v40  ;;  %v336_v39 = vld [vmem:[#allocation2 + $0x1b8] sm:$0xff]  ;;  %v387_v40 = vld [vmem:[#allocation2 + $0x350] sm:$0xff] }
  0x53   :  { %501 = vmatpush.msrb.mxu1 %v392_v38  ;;  %475 = vmatpush.msrb.mxu0 %v335_v41  ;;  %v1610_v38 = vperm.slane %v174_v27, 1  ;;  %v298_v41 = vld [vmem:[#allocation2 + $0x88] sm:$0xff] }
  0x54   :  { %534 = vmatpush.msrb.mxu2 %v285_v43  ;;  %448 = vmatpush.msra.mxu3 %v281_v44  ;;  %v337_v43 = vld [vmem:[#allocation2 + $0x1c0] sm:$0xff] }
  0x55   :  { %502 = vmatpush.msrb.mxu1 %v389_v42  ;;  %476 = vmatpush.msrb.mxu0 %v332_v45  ;;  %v333_v45 = vld [vmem:[#allocation2 + $0x1a0] sm:$0xff] }
  0x56   :  { %535 = vmatpush.msrb.mxu2 %v282_v47  ;;  %549 = vmatpush.msrb.mxu3 %v375_v48  ;;  %v295_v47 = vld [vmem:[#allocation2 + $0x70] sm:$0xff] }
  0x57   :  { %503 = vmatpush.msrb.mxu1 %v386_v46  ;;  %477 = vmatpush.msrb.mxu0 %v329_v49  ;;  %v384_v46 = vld [vmem:[#allocation2 + $0x338] sm:$0xff]  ;;  %v334_v49 = vld [vmem:[#allocation2 + $0x1a8] sm:$0xff] }
  0x58   :  { %636 = vmatpush.msra.mxu2 %v376_v51  ;;  %550 = vmatpush.msrb.mxu3 %v372_v52  ;;  %v1616_v52 = vperm.slane %v174_v27, 2  ;;  %v397_v27 = vld [vmem:[#allocation2 + $0x3a0] sm:$0xff] }
  0x59   :  { %504 = vmatpush.msrb.mxu1 %v383_v50  ;;  %578 = vmatpush.msra.mxu0 %v423_v54  ;;  %v381_v54 = vld [vmem:[#allocation2 + $0x320] sm:$0xff] }
  0x5a   :  { %637 = vmatpush.msra.mxu2 %v373_v55  ;;  %551 = vmatpush.msrb.mxu3 %v369_v56  ;;  %v292_v55 = vld [vmem:[#allocation2 + $0x58] sm:$0xff]  ;;  %v331_v56 = vld [vmem:[#allocation2 + $0x190] sm:$0xff] }
  0x5b   :  { %505 = vmatpush.msrb.mxu1 %v380_v53  ;;  %579 = vmatpush.msra.mxu0 %v420_v58  ;;  %v330_v53 = vld [vmem:[#allocation2 + $0x188] sm:$0xff]  ;;  %v424_v58 = vld [vmem:[#allocation2 + $0x478] sm:$0xff] }
  0x5c   :  { %638 = vmatpush.msra.mxu2 %v370_v59  ;;  %552 = vmatpush.msrb.mxu3 %v366_v60  ;;  %v378_v59 = vld [vmem:[#allocation2 + $0x308] sm:$0xff]  ;;  %v289_v60 = vld [vmem:[#allocation2 + $0x40] sm:$0xff] }
  0x5d   :  { %506 = vmatpush.msrb.mxu1 %v377_v57  ;;  %580 = vmatpush.msra.mxu0 %v417_v61 }
  0x5e   :  { %639 = vmatpush.msra.mxu2 %v367_v63  ;;  %553 = vmatpush.msrb.mxu3 %v363_v0  ;;  %v421_v63 = vld [vmem:[#allocation2 + $0x460] sm:$0xff]  ;;  %v286_v0 = vld [vmem:[#allocation2 + $0x28] sm:$0xff] }
  0x5f   :  { %607 = vmatpush.msra.mxu1 %v328_v62  ;;  %581 = vmatpush.msra.mxu0 %v414_v1 }
  0x60   :  { %640 = vmatpush.msra.mxu2 %v364_v3  ;;  %554 = vmatpush.msrb.mxu3 %v360_v4 }
  0x61   :  { %608 = vmatpush.msra.mxu1 %v325_v2  ;;  %582 = vmatpush.msra.mxu0 %v411_v5  ;;  %v418_v2 = vld [vmem:[#allocation2 + $0x448] sm:$0xff]  ;;  %v283_v5 = vld [vmem:[#allocation2 + $0x10] sm:$0xff] }
  0x62   :  { %641 = vmatpush.msra.mxu2 %v361_v7  ;;  %555 = vmatpush.msrb.mxu3 %v357_v8 }
  0x63   :  { %609 = vmatpush.msra.mxu1 %v322_v6  ;;  %583 = vmatpush.msra.mxu0 %v408_v9  ;;  %v415_v9 = vld [vmem:[#allocation2 + $0x430] sm:$0xff] }
  0x64   :  { %642 = vmatpush.msra.mxu2 %v358_v11  ;;  %556 = vmatpush.msrb.mxu3 %v354_v12  ;;  %v412_v11 = vld [vmem:[#allocation2 + $0x418] sm:$0xff] }
  0x65   :  { %610 = vmatpush.msra.mxu1 %v319_v10  ;;  %584 = vmatpush.msra.mxu0 %v405_v13 }
  0x66   :  { %643 = vmatpush.msra.mxu2 %v355_v15  ;;  %557 = vmatpush.msrb.mxu3 %v351_v16 }
  0x67   :  { %611 = vmatpush.msra.mxu1 %v316_v14  ;;  %585 = vmatpush.msra.mxu0 %v402_v17  ;;  %v409_v14 = vld [vmem:[#allocation2 + $0x400] sm:$0xff] }
  0x68   :  { %644 = vmatpush.msra.mxu2 %v352_v19  ;;  %558 = vmatpush.msrb.mxu3 %v348_v20 }
  0x69   :  { %612 = vmatpush.msra.mxu1 %v313_v18  ;;  %586 = vmatpush.msra.mxu0 %v399_v21  ;;  %v406_v18 = vld [vmem:[#allocation2 + $0x3e8] sm:$0xff] }
  0x6a   :  { %645 = vmatpush.msra.mxu2 %v349_v23  ;;  %559 = vmatpush.msrb.mxu3 %v345_v24  ;;  %v400_v24 = vld [vmem:[#allocation2 + $0x3b8] sm:$0xff] }
  0x6b   :  { %613 = vmatpush.msra.mxu1 %v310_v22  ;;  %587 = vmatpush.msra.mxu0 %v396_v25  ;;  %v403_v22 = vld [vmem:[#allocation2 + $0x3d0] sm:$0xff] }
  0x6c   :  { %646 = vmatpush.msra.mxu2 %v346_v28  ;;  %560 = vmatpush.msrb.mxu3 %v342_v29 }
  0x6d   :  { %614 = vmatpush.msra.mxu1 %v307_v26  ;;  %588 = vmatpush.msra.mxu0 %v393_v30 }
  0x6e   :  { %647 = vmatpush.msra.mxu2 %v343_v32  ;;  %561 = vmatpush.msrb.mxu3 %v339_v34 }
  0x6f   :  { %615 = vmatpush.msra.mxu1 %v304_v31  ;;  %589 = vmatpush.msra.mxu0 %v390_v35  ;;  %v394_v31 = vld [vmem:[#allocation2 + $0x388] sm:$0xff] }
  0x70   :  { %648 = vmatpush.msra.mxu2 %v340_v37  ;;  %562 = vmatpush.msrb.mxu3 %v336_v39  ;;  %v388_v39 = vld [vmem:[#allocation2 + $0x358] sm:$0xff] }
  0x71   :  { %616 = vmatpush.msra.mxu1 %v301_v36  ;;  %590 = vmatpush.msra.mxu0 %v387_v40  ;;  %v391_v36 = vld [vmem:[#allocation2 + $0x370] sm:$0xff] }
  0x72   :  { %649 = vmatpush.msra.mxu2 %v337_v43  ;;  %563 = vmatpush.msrb.mxu3 %v333_v45  ;;  %v382_v43 = vld [vmem:[#allocation2 + $0x328] sm:$0xff]  ;;  %v720_v45 = vld [vmem:[#allocation4 + $0x70] sm:$0xff] }
  0x73   :  { %617 = vmatpush.msra.mxu1 %v298_v41  ;;  %591 = vmatpush.msra.mxu0 %v384_v46  ;;  %v719_v46 = vld [vmem:[#allocation4 + $0x68] sm:$0xff] }
  0x74   :  { %650 = vmatpush.msra.mxu2 %v334_v49  ;;  %564 = vmatpush.msrb.mxu3 %v330_v53  ;;  %v716_v49 = vld [vmem:[#allocation4 + $0x50] sm:$0xff] }
  0x75   :  { %618 = vmatpush.msra.mxu1 %v295_v47  ;;  %592 = vmatpush.msra.mxu0 %v381_v54  ;;  %v718_v47 = vld [vmem:[#allocation4 + $0x60] sm:$0xff]  ;;  %v712_v53 = vld [vmem:[#allocation4 + $0x30] sm:$0xff]  ;;  %v711_v54 = vld [vmem:[#allocation4 + $0x28] sm:$0xff] }
  0x76   :  { %651 = vmatpush.msra.mxu2 %v331_v56  ;;  %v709_v56 = vld [vmem:[#allocation4 + $0x18] sm:$0xff] }
  0x77   :  { %619 = vmatpush.msra.mxu1 %v292_v55  ;;  %593 = vmatpush.msra.mxu0 %v378_v59  ;;  %v710_v55 = vld [vmem:[#allocation4 + $0x20] sm:$0xff] }
  0x78   :  { %v706_v59 = vld [vmem:[#allocation4] sm:$0xff] }
  0x79   :  { %620 = vmatpush.msra.mxu1 %v289_v60  ;;  %v737_v60 = vld [vmem:[#allocation4 + $0xf8] sm:$0xff] }
  0x7b   :  { %621 = vmatpush.msra.mxu1 %v286_v0  ;;  %v916_v0 = vld [vmem:[#allocation7 + $0x70] sm:$0xff] }
  0x7d   :  { %622 = vmatpush.msra.mxu1 %v283_v5  ;;  %v732_v5 = vld [vmem:[#allocation4 + $0xd0] sm:$0xff] }
  0xb3   :  { %v199_v42 = vpop.f32.mrf.mxu0 }
  0xb4   :  { %v200_v44 = vadd.f32 %v199_v42, %v1608_v33  ;;  %v385_v42 = vld [vmem:[#allocation2 + $0x340] sm:$0xff] }
  0xb5   :  { %v228_v48 = vpop.f32.mrf.mxu1 }
  0xb6   :  { %v1613_v50 = vmax.f32 %v200_v44, 0.0  ;;  %v229_v51 = vadd.f32 %v228_v48, %v1610_v38  ;;  %v379_v44 = vld [vmem:[#allocation2 + $0x310] sm:$0xff]  ;;  %v717_v48 = vld [vmem:[#allocation4 + $0x58] sm:$0xff] }
  0xb8   :  { %v1618_v57 = vmax.f32 %v229_v51, 0.0  ;;  %449 = vmatmul.f32.vlgmr.msra.gmra.mxu3 %v1613_v50  ;;  %536 = vmatmul.f32.vlgmr.msrb.gmra.mxu2 %v1613_v50  ;;  %v714_v51 = vld [vmem:[#allocation4 + $0x40] sm:$0xff] }
  0xb9   :  { %665 = vmatpush.msra.mxu3 %v424_v58  ;;  %v707_v58 = vld [vmem:[#allocation4 + $0x8] sm:$0xff] }
  0xba   :  { %v257_v61 = vpop.f32.mrf.mxu2  ;;  %478 = vmatmul.f32.vlgmr.msrb.gmra.mxu0 %v1618_v57 }
  0xbb   :  { %v258_v62 = vadd.f32 %v257_v61, %v1616_v52  ;;  %v202_v1 = vpop.f32.mrf.mxu0  ;;  %666 = vmatpush.msra.mxu3 %v421_v63  ;;  %v736_v61 = vld [vmem:[#allocation4 + $0xf0] sm:$0xff]  ;;  %v735_v63 = vld [vmem:[#allocation4 + $0xe8] sm:$0xff] }
  0xbc   :  { %v203_v4 = vadd.f32 %v202_v1, %v1608_v33  ;;  %v734_v1 = vld [vmem:[#allocation4 + $0xe0] sm:$0xff] }
  0xbd   :  { %v1624_v3 = vmax.f32 %v258_v62, 0.0  ;;  %v231_v6 = vpop.f32.mrf.mxu1  ;;  %667 = vmatpush.msra.mxu3 %v418_v2  ;;  %v917_v62 = vld [vmem:[#allocation7 + $0x78] sm:$0xff]  ;;  %v915_v2 = vld [vmem:[#allocation7 + $0x68] sm:$0xff] }
  0xbe   :  { %v1627_v7 = vmax.f32 %v203_v4, 0.0  ;;  %v232_v8 = vadd.f32 %v231_v6, %v1610_v38  ;;  %v914_v4 = vld [vmem:[#allocation7 + $0x60] sm:$0xff]  ;;  %v913_v6 = vld [vmem:[#allocation7 + $0x58] sm:$0xff] }
  0xbf   :  { %507 = vmatmul.f32.vlgmr.msrb.gmra.mxu1 %v1624_v3  ;;  %668 = vmatpush.msra.mxu3 %v415_v9  ;;  %v730_v9 = vld [vmem:[#allocation4 + $0xc0] sm:$0xff] }
  0xc0   :  { %v1631_v10 = vmax.f32 %v232_v8, 0.0  ;;  %452 = vmatmul.f32.gmra.mxu3 %v1627_v7  ;;  %539 = vmatmul.f32.gmra.mxu2 %v1627_v7  ;;  %v912_v8 = vld [vmem:[#allocation7 + $0x50] sm:$0xff] }
  0xc1   :  { %669 = vmatpush.msra.mxu3 %v412_v11  ;;  %787 = vmatpush.msrb.mxu1 %v737_v60  ;;  %v729_v11 = vld [vmem:[#allocation4 + $0xb8] sm:$0xff]  ;;  %v747_v60 = vld [vmem:[#allocation4 + $0x148] sm:$0xff] }
  0xc2   :  { %v260_v12 = vpop.f32.mrf.mxu2  ;;  %481 = vmatmul.f32.gmra.mxu0 %v1631_v10 }
  0xc3   :  { %v261_v13 = vadd.f32 %v260_v12, %v1616_v52  ;;  %v205_v15 = vpop.f32.mrf.mxu0  ;;  %670 = vmatpush.msra.mxu3 %v409_v14  ;;  %788 = vmatpush.msrb.mxu1 %v736_v61  ;;  %v910_v12 = vld [vmem:[#allocation7 + $0x40] sm:$0xff]  ;;  %v728_v14 = vld [vmem:[#allocation4 + $0xb0] sm:$0xff] }
  0xc4   :  { %v206_v17 = vadd.f32 %v205_v15, %v1608_v33  ;;  %v909_v15 = vld [vmem:[#allocation7 + $0x38] sm:$0xff]  ;;  %v928_v61 = vld [vmem:[#allocation7 + $0xd0] sm:$0xff] }
  0xc5   :  { %v1637_v16 = vmax.f32 %v261_v13, 0.0  ;;  %v234_v19 = vpop.f32.mrf.mxu1  ;;  %671 = vmatpush.msra.mxu3 %v406_v18  ;;  %789 = vmatpush.msrb.mxu1 %v735_v63  ;;  %v1659_v13 = vld [vmem:[%s1770_s4] sm:$0x7]  ;;  %v908_v18 = vld [vmem:[#allocation7 + $0x30] sm:$0xff] }
  0xc6   :  { %v275_v20 = vmax.f32 %v206_v17, 0.0  ;;  %v235_v21 = vadd.f32 %v234_v19, %v1610_v38  ;;  %v727_v17 = vld [vmem:[#allocation4 + $0xa8] sm:$0xff]  ;;  %v1662_v19 = vperm.slane %v1659_v13, 0  ;;  %v746_v63 = vld [vmem:[#allocation4 + $0x140] sm:$0xff] }
  0xc7   :  { %510 = vmatmul.f32.gmra.mxu1 %v1637_v16  ;;  %672 = vmatpush.msra.mxu3 %v403_v22 }
  0xc8   :  { %v276_v23 = vmax.f32 %v235_v21, 0.0  ;;  %455 = vmatmul.f32.gmra.mxu3 %v275_v20  ;;  %542 = vmatmul.f32.gmra.mxu2 %v275_v20  ;;  %v907_v21 = vld [vmem:[#allocation7 + $0x28] sm:$0xff] }
  0xc9   :  { %673 = vmatpush.msra.mxu3 %v400_v24  ;;  %790 = vmatpush.msrb.mxu1 %v734_v1  ;;  %v725_v24 = vld [vmem:[#allocation4 + $0x98] sm:$0xff]  ;;  %v927_v1 = vld [vmem:[#allocation7 + $0xc8] sm:$0xff] }
  0xca   :  { %v263_v25 = vpop.f32.mrf.mxu2  ;;  %484 = vmatmul.f32.gmra.mxu0 %v276_v23 }
  0xcb   :  { %v264_v26 = vadd.f32 %v263_v25, %v1616_v52  ;;  %v208_v28 = vpop.f32.mrf.mxu0  ;;  %674 = vmatpush.msra.mxu3 %v397_v27  ;;  %v906_v25 = vld [vmem:[#allocation7 + $0x20] sm:$0xff]  ;;  %v724_v27 = vld [vmem:[#allocation4 + $0x90] sm:$0xff] }
  0xcc   :  { %v209_v30 = vadd.f32 %v208_v28, %v1608_v33  ;;  %v905_v28 = vld [vmem:[#allocation7 + $0x18] sm:$0xff] }
  0xcd   :  { %v277_v29 = vmax.f32 %v264_v26, 0.0  ;;  %v237_v32 = vpop.f32.mrf.mxu1  ;;  %675 = vmatpush.msra.mxu3 %v394_v31  ;;  %v723_v31 = vld [vmem:[#allocation4 + $0x88] sm:$0xff] }
  0xce   :  { %v278_v34 = vmax.f32 %v209_v30, 0.0  ;;  %v238_v35 = vadd.f32 %v237_v32, %v1610_v38  ;;  %v721_v38 = vld [vmem:[#allocation4 + $0x78] sm:$0xff]  ;;  %v904_v32 = vld [vmem:[#allocation7 + $0x10] sm:$0xff] }
  0xcf   :  { %513 = vmatmul.f32.gmra.mxu1 %v277_v29  ;;  %676 = vmatpush.msra.mxu3 %v391_v36  ;;  %v722_v36 = vld [vmem:[#allocation4 + $0x80] sm:$0xff] }
  0xd0   :  { %v279_v37 = vmax.f32 %v238_v35, 0.0  ;;  %458 = vmatmul.f32.gmra.mxu3 %v278_v34  ;;  %545 = vmatmul.f32.gmra.mxu2 %v278_v34  ;;  %v753_v35 = vld [vmem:[#allocation4 + $0x178] sm:$0xff] }
  0xd1   :  { %677 = vmatpush.msra.mxu3 %v388_v39  ;;  %758 = vmatpush.msrb.mxu0 %v721_v38  ;;  %v751_v38 = vld [vmem:[#allocation4 + $0x168] sm:$0xff] }
  0xd2   :  { %v266_v40 = vpop.f32.mrf.mxu2  ;;  %487 = vmatmul.f32.gmra.mxu0 %v279_v37  ;;  %816 = vmatpush.msrb.mxu2 %v753_v35  ;;  %v919_v35 = vld [vmem:[#allocation7 + $0x88] sm:$0xff] }
  0xd3   :  { %v267_v41 = vadd.f32 %v266_v40, %v1616_v52  ;;  %678 = vmatpush.msra.mxu3 %v385_v42  ;;  %759 = vmatpush.msrb.mxu0 %v720_v45  ;;  %v713_v52 = vld [vmem:[#allocation4 + $0x38] sm:$0xff]  ;;  %v752_v40 = vld [vmem:[#allocation4 + $0x170] sm:$0xff] }
  0xd4   :  { %817 = vmatpush.msrb.mxu2 %v752_v40  ;;  %v932_v45 = vld [vmem:[#allocation7 + $0xf0] sm:$0xff]  ;;  %v949_v40 = vld [vmem:[#allocation7 + $0x178] sm:$0xff] }
  0xd5   :  { %v280_v33 = vmax.f32 %v267_v41, 0.0  ;;  %679 = vmatpush.msra.mxu3 %v382_v43  ;;  %760 = vmatpush.msrb.mxu0 %v719_v46  ;;  %v933_v43 = vld [vmem:[#allocation7 + $0xf8] sm:$0xff] }
  0xd6   :  { %818 = vmatpush.msrb.mxu2 %v751_v38 }
  0xd7   :  { %516 = vmatmul.f32.gmra.mxu1 %v280_v33  ;;  %680 = vmatpush.msra.mxu3 %v379_v44 }
  0xd8   :  { %565 = vmatmul.f32.vlgmr.msrb.gmra.mxu3 %v1618_v57  ;;  %652 = vmatmul.f32.vlgmr.msra.gmra.mxu2 %v1618_v57  ;;  %v708_v57 = vld [vmem:[#allocation4 + $0x10] sm:$0xff] }
  0xd9   :  { %761 = vmatpush.msrb.mxu0 %v718_v47  ;;  %v750_v47 = vld [vmem:[#allocation4 + $0x160] sm:$0xff] }
  0xda   :  { %594 = vmatmul.f32.vlgmr.msra.gmra.mxu0 %v1624_v3  ;;  %819 = vmatpush.msrb.mxu2 %v750_v47  ;;  %v946_v47 = vld [vmem:[#allocation7 + $0x160] sm:$0xff] }
  0xdb   :  { %762 = vmatpush.msrb.mxu0 %v717_v48 }
  0xdd   :  { %763 = vmatpush.msrb.mxu0 %v716_v49  ;;  %v931_v49 = vld [vmem:[#allocation7 + $0xe8] sm:$0xff] }
  0xdf   :  { %623 = vmatmul.f32.vlgmr.msra.gmra.mxu1 %v1613_v50  ;;  %v715_v50 = vld [vmem:[#allocation4 + $0x48] sm:$0xff] }
  0xe0   :  { %568 = vmatmul.f32.gmra.mxu3 %v1631_v10  ;;  %655 = vmatmul.f32.gmra.mxu2 %v1631_v10  ;;  %v911_v10 = vld [vmem:[#allocation7 + $0x48] sm:$0xff] }
  0xe1   :  { %764 = vmatpush.msrb.mxu0 %v715_v50  ;;  %v749_v50 = vld [vmem:[#allocation4 + $0x158] sm:$0xff] }
  0xe2   :  { %597 = vmatmul.f32.gmra.mxu0 %v1637_v16  ;;  %820 = vmatpush.msrb.mxu2 %v749_v50 }
  0xe3   :  { %765 = vmatpush.msrb.mxu0 %v714_v51  ;;  %v930_v51 = vld [vmem:[#allocation7 + $0xe0] sm:$0xff] }
  0xe5   :  { %766 = vmatpush.msrb.mxu0 %v713_v52 }
  0xe7   :  { %626 = vmatmul.f32.gmra.mxu1 %v1627_v7  ;;  %767 = vmatpush.msrb.mxu0 %v712_v53  ;;  %v731_v7 = vld [vmem:[#allocation4 + $0xc8] sm:$0xff] }
  0xe8   :  { %571 = vmatmul.f32.gmra.mxu3 %v276_v23  ;;  %658 = vmatmul.f32.gmra.mxu2 %v276_v23 }
  0xe9   :  { %768 = vmatpush.msrb.mxu0 %v711_v54  ;;  %v748_v54 = vld [vmem:[#allocation4 + $0x150] sm:$0xff] }
  0xea   :  { %600 = vmatmul.f32.gmra.mxu0 %v277_v29  ;;  %821 = vmatpush.msrb.mxu2 %v748_v54  ;;  %v944_v54 = vld [vmem:[#allocation7 + $0x150] sm:$0xff] }
  0xeb   :  { %769 = vmatpush.msrb.mxu0 %v710_v55 }
  0xec   :  { %822 = vmatpush.msrb.mxu2 %v747_v60 }
  0xed   :  { %770 = vmatpush.msrb.mxu0 %v709_v56 }
  0xee   :  { %823 = vmatpush.msrb.mxu2 %v746_v63  ;;  %v429_v63 = vperm.slane %v1659_v13, 2 }
  0xef   :  { %629 = vmatmul.f32.gmra.mxu1 %v275_v20  ;;  %771 = vmatpush.msrb.mxu0 %v708_v57  ;;  %v726_v20 = vld [vmem:[#allocation4 + $0xa0] sm:$0xff]  ;;  %v929_v57 = vld [vmem:[#allocation7 + $0xd8] sm:$0xff] }
  0xf0   :  { %574 = vmatmul.f32.gmra.mxu3 %v279_v37  ;;  %661 = vmatmul.f32.gmra.mxu2 %v279_v37  ;;  %v903_v37 = vld [vmem:[#allocation7 + $0x8] sm:$0xff] }
  0xf1   :  { %772 = vmatpush.msrb.mxu0 %v707_v58 }
  0xf2   :  { %603 = vmatmul.f32.gmra.mxu0 %v280_v33 }
  0xf3   :  { %773 = vmatpush.msrb.mxu0 %v706_v59 }
  0xf5   :  { %954 = vmatpush.msra.mxu0 %v917_v62 }
  0xf7   :  { %632 = vmatmul.f32.gmra.mxu1 %v278_v34  ;;  %955 = vmatpush.msra.mxu0 %v916_v0 }
  0xf8   :  { %681 = vmatmul.f32.vlgmr.msra.gmra.mxu3 %v1624_v3  ;;  %v733_v3 = vld [vmem:[#allocation4 + $0xd8] sm:$0xff] }
  0xf9   :  { %956 = vmatpush.msra.mxu0 %v915_v2  ;;  %791 = vmatpush.msrb.mxu1 %v733_v3  ;;  %v745_v2 = vld [vmem:[#allocation4 + $0x138] sm:$0xff] }
  0xfa   :  { %824 = vmatpush.msrb.mxu2 %v745_v2 }
  0xfb   :  { %957 = vmatpush.msra.mxu0 %v914_v4  ;;  %792 = vmatpush.msrb.mxu1 %v732_v5  ;;  %v926_v4 = vld [vmem:[#allocation7 + $0xc0] sm:$0xff] }
  0xfd   :  { %958 = vmatpush.msra.mxu0 %v913_v6  ;;  %793 = vmatpush.msrb.mxu1 %v731_v7  ;;  %v744_v6 = vld [vmem:[#allocation4 + $0x130] sm:$0xff] }
  0xfe   :  { %825 = vmatpush.msrb.mxu2 %v744_v6 }
  0xff   :  { %959 = vmatpush.msra.mxu0 %v912_v8  ;;  %794 = vmatpush.msrb.mxu1 %v730_v9  ;;  %v925_v8 = vld [vmem:[#allocation7 + $0xb8] sm:$0xff] }
 0x100   :  { %684 = vmatmul.f32.gmra.mxu3 %v1637_v16 }
 0x101   :  { %960 = vmatpush.msra.mxu0 %v911_v10  ;;  %795 = vmatpush.msrb.mxu1 %v729_v11  ;;  %v743_v11 = vld [vmem:[#allocation4 + $0x128] sm:$0xff] }
 0x102   :  { %826 = vmatpush.msrb.mxu2 %v743_v11 }
 0x103   :  { %961 = vmatpush.msra.mxu0 %v910_v12  ;;  %796 = vmatpush.msrb.mxu1 %v728_v14  ;;  %v924_v12 = vld [vmem:[#allocation7 + $0xb0] sm:$0xff]  ;;  %v1684_v14 = vperm.slane %v1659_v13, 1  ;;  %v937_v13 = vld [vmem:[#allocation7 + $0x118] sm:$0xff] }
 0x105   :  { %962 = vmatpush.msra.mxu0 %v909_v15  ;;  %797 = vmatpush.msrb.mxu1 %v727_v17  ;;  %v923_v17 = vld [vmem:[#allocation7 + $0xa8] sm:$0xff] }
 0x107   :  { %963 = vmatpush.msra.mxu0 %v908_v18  ;;  %798 = vmatpush.msrb.mxu1 %v726_v20 }
 0x108   :  { %687 = vmatmul.f32.gmra.mxu3 %v277_v29 }
 0x109   :  { %964 = vmatpush.msra.mxu0 %v907_v21  ;;  %799 = vmatpush.msrb.mxu1 %v725_v24  ;;  %v741_v21 = vld [vmem:[#allocation4 + $0x118] sm:$0xff] }
 0x10b   :  { %965 = vmatpush.msra.mxu0 %v906_v25  ;;  %800 = vmatpush.msrb.mxu1 %v724_v27  ;;  %v740_v25 = vld [vmem:[#allocation4 + $0x110] sm:$0xff]  ;;  %v921_v27 = vld [vmem:[#allocation7 + $0x98] sm:$0xff] }
 0x10d   :  { %966 = vmatpush.msra.mxu0 %v905_v28  ;;  %801 = vmatpush.msrb.mxu1 %v723_v31 }
 0x10f   :  { %967 = vmatpush.msra.mxu0 %v904_v32  ;;  %802 = vmatpush.msrb.mxu1 %v722_v36  ;;  %v738_v32 = vld [vmem:[#allocation4 + $0x100] sm:$0xff] }
 0x110   :  { %690 = vmatmul.f32.gmra.mxu3 %v280_v33  ;;  %v902_v33 = vld [vmem:[#allocation7] sm:$0xff] }
 0x111   :  { %968 = vmatpush.msra.mxu0 %v903_v37  ;;  %983 = vmatpush.msra.mxu1 %v933_v43  ;;  %v948_v43 = vld [vmem:[#allocation7 + $0x170] sm:$0xff] }
 0x113   :  { %969 = vmatpush.msra.mxu0 %v902_v33  ;;  %984 = vmatpush.msra.mxu1 %v932_v45  ;;  %v947_v45 = vld [vmem:[#allocation7 + $0x168] sm:$0xff] }
 0x115   :  { %985 = vmatpush.msra.mxu1 %v931_v49  ;;  %v945_v49 = vld [vmem:[#allocation7 + $0x158] sm:$0xff] }
 0x117   :  { %986 = vmatpush.msra.mxu1 %v930_v51 }
 0x119   :  { %987 = vmatpush.msra.mxu1 %v929_v57  ;;  %v943_v57 = vld [vmem:[#allocation7 + $0x148] sm:$0xff] }
 0x11b   :  { %988 = vmatpush.msra.mxu1 %v928_v61  ;;  %v941_v61 = vld [vmem:[#allocation7 + $0x138] sm:$0xff] }
 0x11d   :  { %989 = vmatpush.msra.mxu1 %v927_v1 }
 0x11f   :  { %990 = vmatpush.msra.mxu1 %v926_v4  ;;  %v939_v4 = vld [vmem:[#allocation7 + $0x128] sm:$0xff] }
 0x121   :  { %991 = vmatpush.msra.mxu1 %v925_v8  ;;  %v938_v8 = vld [vmem:[#allocation7 + $0x120] sm:$0xff] }
 0x123   :  { %992 = vmatpush.msra.mxu1 %v924_v12  ;;  %v936_v12 = vld [vmem:[#allocation7 + $0x110] sm:$0xff] }
 0x125   :  { %993 = vmatpush.msra.mxu1 %v923_v17 }
 0x137   :  { %v479_v16 = vpop.f32.mrf.mxu0 }
 0x13b   :  { %v450_v22 = vpop.f32.mrf.mxu3  ;;  %v537_v55 = vpop.f32.mrf.mxu2 }
 0x13c   :  { %v508_v23 = vpop.f32.mrf.mxu1  ;;  %v451_v26 = vadd.f32 %v450_v22, %v1662_v19  ;;  %v922_v22 = vld [vmem:[#allocation7 + $0xa0] sm:$0xff] }
 0x13d   :  { %994 = vmatpush.msra.mxu1 %v922_v22 }
 0x13e   :  { %v480_v29 = vadd.f32 %v479_v16, %v451_v26  ;;  %v742_v16 = vld [vmem:[#allocation4 + $0x120] sm:$0xff] }
 0x13f   :  { %v482_v30 = vpop.f32.mrf.mxu0  ;;  %827 = vmatpush.msrb.mxu2 %v742_v16  ;;  %995 = vmatpush.msra.mxu1 %v921_v27 }
 0x140   :  { %v1665_v34 = vadd.f32 %v508_v23, %v480_v29  ;;  %v538_v23 = vadd.f32 %v537_v55, %v1684_v14  ;;  %v739_v29 = vld [vmem:[#allocation4 + $0x108] sm:$0xff] }
 0x141   :  { %828 = vmatpush.msrb.mxu2 %v741_v21 }
 0x142   :  { %v694_v39 = vmax.f32 %v1665_v34, 0.0 }
 0x143   :  { %v453_v41 = vpop.f32.mrf.mxu3  ;;  %v540_v10 = vpop.f32.mrf.mxu2  ;;  %829 = vmatpush.msrb.mxu2 %v740_v25 }
 0x144   :  { %v511_v42 = vpop.f32.mrf.mxu1  ;;  %v454_v44 = vadd.f32 %v453_v41, %v1662_v19  ;;  %774 = vmatmul.f32.vlgmr.msrb.gmra.mxu0 %v694_v39  ;;  %v918_v41 = vld [vmem:[#allocation7 + $0x80] sm:$0xff]  ;;  %v541_v33 = vadd.f32 %v540_v10, %v1684_v14 }
 0x145   :  { %830 = vmatpush.msrb.mxu2 %v739_v29 }
 0x146   :  { %v483_v46 = vadd.f32 %v482_v30, %v454_v44  ;;  %v920_v30 = vld [vmem:[#allocation7 + $0x90] sm:$0xff] }
 0x147   :  { %v485_v48 = vpop.f32.mrf.mxu0  ;;  %996 = vmatpush.msra.mxu1 %v920_v30  ;;  %831 = vmatpush.msrb.mxu2 %v738_v32 }
 0x148   :  { %v1671_v52 = vadd.f32 %v511_v42, %v483_v46 }
 0x149   :  { %997 = vmatpush.msra.mxu1 %v919_v35  ;;  %1012 = vmatpush.msra.mxu2 %v949_v40 }
 0x14a   :  { %v697_v53 = vmax.f32 %v1671_v52, 0.0 }
 0x14b   :  { %v456_v56 = vpop.f32.mrf.mxu3  ;;  %v543_v36 = vpop.f32.mrf.mxu2  ;;  %998 = vmatpush.msra.mxu1 %v918_v41  ;;  %1013 = vmatpush.msra.mxu2 %v948_v43  ;;  %v864_v41 = vld [vmem:[#allocation6 + $0x78] sm:$0xff]  ;;  %v861_v43 = vld [vmem:[#allocation6 + $0x60] sm:$0xff] }
 0x14c   :  { %v457_v58 = vadd.f32 %v456_v56, %v1662_v19  ;;  %777 = vmatmul.f32.gmra.mxu0 %v697_v53  ;;  %v514_v59 = vpop.f32.mrf.mxu1  ;;  %v544_v51 = vadd.f32 %v543_v36, %v1684_v14  ;;  %869 = vmatpush.msrb.mxu3 %v864_v41 }
 0x14d   :  { %1014 = vmatpush.msra.mxu2 %v947_v45  ;;  %v858_v45 = vld [vmem:[#allocation6 + $0x48] sm:$0xff] }
 0x14e   :  { %v486_v62 = vadd.f32 %v485_v48, %v457_v58 }
 0x14f   :  { %v488_v0 = vpop.f32.mrf.mxu0  ;;  %1015 = vmatpush.msra.mxu2 %v946_v47  ;;  %v856_v47 = vld [vmem:[#allocation6 + $0x38] sm:$0xff] }
 0x150   :  { %v1677_v3 = vadd.f32 %v514_v59, %v486_v62  ;;  %v942_v59 = vld [vmem:[#allocation7 + $0x140] sm:$0xff] }
 0x151   :  { %1016 = vmatpush.msra.mxu2 %v945_v49  ;;  %v854_v49 = vld [vmem:[#allocation6 + $0x28] sm:$0xff] }
 0x152   :  { %v700_v5 = vmax.f32 %v1677_v3, 0.0 }
 0x153   :  { %v459_v7 = vpop.f32.mrf.mxu3  ;;  %v546_v50 = vpop.f32.mrf.mxu2  ;;  %1017 = vmatpush.msra.mxu2 %v944_v54  ;;  %v851_v54 = vld [vmem:[#allocation6 + $0x10] sm:$0xff] }
 0x154   :  { %v460_v9 = vadd.f32 %v459_v7, %v1662_v19  ;;  %780 = vmatmul.f32.gmra.mxu0 %v700_v5  ;;  %v517_v18 = vpop.f32.mrf.mxu1  ;;  %v547_v62 = vadd.f32 %v546_v50, %v1684_v14  ;;  %v853_v50 = vld [vmem:[#allocation6 + $0x20] sm:$0xff] }
 0x155   :  { %1018 = vmatpush.msra.mxu2 %v943_v57  ;;  %v1058_v57 = vld [vmem:[#allocation9 + $0x68] sm:$0xff] }
 0x156   :  { %v489_v15 = vadd.f32 %v488_v0, %v460_v9  ;;  %v940_v0 = vld [vmem:[#allocation7 + $0x130] sm:$0xff] }
 0x157   :  { %v595_v20 = vpop.f32.mrf.mxu0  ;;  %1019 = vmatpush.msra.mxu2 %v942_v59 }
 0x158   :  { %v1686_v19 = vadd.f32 %v517_v18, %v489_v15  ;;  %v935_v15 = vld [vmem:[#allocation7 + $0x108] sm:$0xff]  ;;  %v934_v18 = vld [vmem:[#allocation7 + $0x100] sm:$0xff] }
 0x159   :  { %1020 = vmatpush.msra.mxu2 %v941_v61 }
 0x15a   :  { %v703_v24 = vmax.f32 %v1686_v19, 0.0 }
 0x15b   :  { %v566_v26 = vpop.f32.mrf.mxu3  ;;  %v653_v1 = vpop.f32.mrf.mxu2  ;;  %1021 = vmatpush.msra.mxu2 %v940_v0  ;;  %v1053_v0 = vld [vmem:[#allocation9 + $0x40] sm:$0xff] }
 0x15c   :  { %v567_v28 = vadd.f32 %v566_v26, %v538_v23  ;;  %783 = vmatmul.f32.gmra.mxu0 %v703_v24  ;;  %v624_v56 = vpop.f32.mrf.mxu1 }
 0x15d   :  { %v625_v6 = vadd.f32 %v624_v56, %v429_v63  ;;  %1022 = vmatpush.msra.mxu2 %v939_v4  ;;  %v1059_v56 = vld [vmem:[#allocation9 + $0x70] sm:$0xff]  ;;  %v1197_v4 = vld [vmem:[%s1772_s6] ss:$0 sm:$0xff] }
 0x15e   :  { %v1692_v31 = vadd.f32 %v595_v20, %v567_v28 }
 0x15f   :  { %v598_v42 = vpop.f32.mrf.mxu0  ;;  %1023 = vmatpush.msra.mxu2 %v938_v8  ;;  %v654_v11 = vadd.f32 %v653_v1, %v625_v6  ;;  %v1052_v1 = vld [vmem:[#allocation9 + $0x38] sm:$0xff]  ;;  %v1050_v6 = vld [vmem:[#allocation9 + $0x28] sm:$0xff] }
 0x160   :  { %v695_v37 = vmax.f32 %v1692_v31, 0.0 }
 0x161   :  { %1024 = vmatpush.msra.mxu2 %v937_v13 }
 0x162   :  { %803 = vmatmul.f32.vlgmr.msrb.gmra.mxu1 %v695_v37 }
 0x163   :  { %v569_v44 = vpop.f32.mrf.mxu3  ;;  %1025 = vmatpush.msra.mxu2 %v936_v12  ;;  %v656_v3 = vpop.f32.mrf.mxu2 }
 0x164   :  { %v570_v38 = vadd.f32 %v569_v44, %v541_v33  ;;  %970 = vmatmul.f32.vlgmr.msra.gmra.mxu0 %v694_v39  ;;  %v627_v9 = vpop.f32.mrf.mxu1  ;;  %v862_v33 = vld [vmem:[#allocation6 + $0x68] sm:$0xff]  ;;  %v860_v44 = vld [vmem:[#allocation6 + $0x58] sm:$0xff] }
 0x165   :  { %1026 = vmatpush.msra.mxu2 %v935_v15 }
 0x166   :  { %v1700_v46 = vadd.f32 %v598_v42, %v570_v38  ;;  %v863_v42 = vld [vmem:[#allocation6 + $0x70] sm:$0xff] }
 0x167   :  { %v601_v55 = vpop.f32.mrf.mxu0  ;;  %1027 = vmatpush.msra.mxu2 %v934_v18  ;;  %870 = vmatpush.msrb.mxu3 %v863_v42  ;;  %v859_v38 = vld [vmem:[#allocation6 + $0x50] sm:$0xff] }
 0x168   :  { %v698_v48 = vmax.f32 %v1700_v46, 0.0  ;;  %v857_v46 = vld [vmem:[#allocation6 + $0x40] sm:$0xff] }
 0x169   :  { %871 = vmatpush.msrb.mxu3 %v862_v33 }
 0x16a   :  { %806 = vmatmul.f32.gmra.mxu1 %v698_v48 }
 0x16b   :  { %v572_v34 = vpop.f32.mrf.mxu3  ;;  %v659_v27 = vpop.f32.mrf.mxu2  ;;  %872 = vmatpush.msrb.mxu3 %v861_v43 }
 0x16c   :  { %v573_v39 = vadd.f32 %v572_v34, %v544_v51  ;;  %973 = vmatmul.f32.gmra.mxu0 %v697_v53  ;;  %v630_v20 = vpop.f32.mrf.mxu1  ;;  %v852_v51 = vld [vmem:[#allocation6 + $0x18] sm:$0xff]  ;;  %v849_v34 = vld [vmem:[#allocation6] sm:$0xff] }
 0x16d   :  { %v631_v25 = vadd.f32 %v630_v20, %v429_v63  ;;  %873 = vmatpush.msrb.mxu3 %v860_v44 }
 0x16e   :  { %v602_v58 = vadd.f32 %v601_v55, %v573_v39  ;;  %v850_v55 = vld [vmem:[#allocation6 + $0x8] sm:$0xff]  ;;  %v1060_v39 = vld [vmem:[#allocation9 + $0x78] sm:$0xff] }
 0x16f   :  { %v604_v53 = vpop.f32.mrf.mxu0  ;;  %v660_v19 = vadd.f32 %v659_v27, %v631_v25  ;;  %874 = vmatpush.msrb.mxu3 %v859_v38 }
 0x170   :  { %v701_v60 = vmax.f32 %v602_v58, 0.0  ;;  %v1057_v58 = vld [vmem:[#allocation9 + $0x60] sm:$0xff] }
 0x171   :  { %875 = vmatpush.msrb.mxu3 %v858_v45 }
 0x172   :  { %809 = vmatmul.f32.gmra.mxu1 %v701_v60 }
 0x173   :  { %v575_v2 = vpop.f32.mrf.mxu3  ;;  %v662_v35 = vpop.f32.mrf.mxu2  ;;  %876 = vmatpush.msrb.mxu3 %v857_v46 }
 0x174   :  { %v576_v52 = vadd.f32 %v575_v2, %v547_v62  ;;  %976 = vmatmul.f32.gmra.mxu0 %v700_v5  ;;  %v628_v5 = vadd.f32 %v627_v9, %v429_v63  ;;  %v1055_v62 = vld [vmem:[#allocation9 + $0x50] sm:$0xff]  ;;  %v1048_v9 = vld [vmem:[#allocation9 + $0x18] sm:$0xff] }
 0x175   :  { %877 = vmatpush.msrb.mxu3 %v856_v47 }
 0x176   :  { %v605_v7 = vadd.f32 %v604_v53, %v576_v52  ;;  %v657_v21 = vadd.f32 %v656_v3, %v628_v5  ;;  %v1051_v52 = vld [vmem:[#allocation9 + $0x30] sm:$0xff]  ;;  %v1045_v5 = vld [vmem:[#allocation9] sm:$0xff] }
 0x178   :  { %v704_v10 = vmax.f32 %v605_v7, 0.0  ;;  %v1049_v7 = vld [vmem:[#allocation9 + $0x20] sm:$0xff] }
 0x17a   :  { %812 = vmatmul.f32.gmra.mxu1 %v704_v10 }
 0x17b   :  { %v682_v14 = vpop.f32.mrf.mxu3 }
 0x17c   :  { %v683_v16 = vadd.f32 %v682_v14, %v654_v11  ;;  %979 = vmatmul.f32.gmra.mxu0 %v703_v24  ;;  %v633_v24 = vpop.f32.mrf.mxu1 }
 0x17d   :  { %v634_v30 = vadd.f32 %v633_v24, %v429_v63  ;;  %v1054_v63 = vld [vmem:[#allocation9 + $0x48] sm:$0xff] }
 0x17e   :  { %v696_v17 = vmax.f32 %v683_v16, 0.0  ;;  %v1046_v16 = vld [vmem:[#allocation9 + $0x8] sm:$0xff] }
 0x17f   :  { %v663_v36 = vadd.f32 %v662_v35, %v634_v30 }
 0x180   :  { %832 = vmatmul.f32.vlgmr.msrb.gmra.mxu2 %v696_v17 }
 0x182   :  { %999 = vmatmul.f32.vlgmr.msra.gmra.mxu1 %v695_v37 }
 0x183   :  { %v685_v22 = vpop.f32.mrf.mxu3 }
 0x184   :  { %v686_v23 = vadd.f32 %v685_v22, %v657_v21 }
 0x186   :  { %v699_v26 = vmax.f32 %v686_v23, 0.0 }
 0x188   :  { %835 = vmatmul.f32.gmra.mxu2 %v699_v26 }
 0x18a   :  { %1002 = vmatmul.f32.gmra.mxu1 %v698_v48  ;;  %v855_v48 = vld [vmem:[#allocation6 + $0x30] sm:$0xff] }
 0x18b   :  { %v688_v28 = vpop.f32.mrf.mxu3  ;;  %878 = vmatpush.msrb.mxu3 %v855_v48 }
 0x18c   :  { %v689_v29 = vadd.f32 %v688_v28, %v660_v19 }
 0x18d   :  { %879 = vmatpush.msrb.mxu3 %v854_v49 }
 0x18e   :  { %v702_v32 = vmax.f32 %v689_v29, 0.0 }
 0x18f   :  { %880 = vmatpush.msrb.mxu3 %v853_v50 }
 0x190   :  { %838 = vmatmul.f32.gmra.mxu2 %v702_v32 }
 0x191   :  { %881 = vmatpush.msrb.mxu3 %v852_v51 }
 0x192   :  { %1005 = vmatmul.f32.gmra.mxu1 %v701_v60  ;;  %v1056_v60 = vld [vmem:[#allocation9 + $0x58] sm:$0xff] }
 0x193   :  { %v691_v31 = vpop.f32.mrf.mxu3  ;;  %882 = vmatpush.msrb.mxu3 %v851_v54 }
 0x194   :  { %v692_v37 = vadd.f32 %v691_v31, %v663_v36  ;;  %v1198_v31 = vld [vmem:[%s1776_s10] ss:$0 sm:$0xff] }
 0x195   :  { %883 = vmatpush.msrb.mxu3 %v850_v55 }
 0x196   :  { %v705_v40 = vmax.f32 %v692_v37, 0.0 }
 0x197   :  { %884 = vmatpush.msrb.mxu3 %v849_v34 }
 0x198   :  { %841 = vmatmul.f32.gmra.mxu2 %v705_v40 }
 0x199   :  { %1065 = vmatpush.msra.mxu3 %v1060_v39 }
 0x19a   :  { %1008 = vmatmul.f32.gmra.mxu1 %v704_v10  ;;  %v1047_v10 = vld [vmem:[#allocation9 + $0x10] sm:$0xff] }
 0x19b   :  { %1066 = vmatpush.msra.mxu3 %v1059_v56 }
 0x19d   :  { %1067 = vmatpush.msra.mxu3 %v1058_v57 }
 0x19f   :  { %1068 = vmatpush.msra.mxu3 %v1057_v58 }
 0x1a0   :  { %1028 = vmatmul.f32.vlgmr.msra.gmra.mxu2 %v696_v17 }
 0x1a1   :  { %1069 = vmatpush.msra.mxu3 %v1056_v60 }
 0x1a3   :  { %1070 = vmatpush.msra.mxu3 %v1055_v62 }
 0x1a5   :  { %1071 = vmatpush.msra.mxu3 %v1054_v63 }
 0x1a7   :  { %1072 = vmatpush.msra.mxu3 %v1053_v0 }
 0x1a8   :  { %1031 = vmatmul.f32.gmra.mxu2 %v699_v26 }
 0x1a9   :  { %1073 = vmatpush.msra.mxu3 %v1052_v1  ;;  %v1199_v1 = vld [vmem:[%s1774_s8] ss:$0 sm:$0xff] }
 0x1ab   :  { %1074 = vmatpush.msra.mxu3 %v1051_v52 }
 0x1ad   :  { %1075 = vmatpush.msra.mxu3 %v1050_v6 }
 0x1af   :  { %1076 = vmatpush.msra.mxu3 %v1049_v7 }
 0x1b0   :  { %1034 = vmatmul.f32.gmra.mxu2 %v702_v32 }
 0x1b1   :  { %1077 = vmatpush.msra.mxu3 %v1048_v9 }
 0x1b3   :  { %1078 = vmatpush.msra.mxu3 %v1047_v10  ;;  %v1200_v10 = vld [vmem:[%s1778_s12] ss:$0 sm:$0xff] }
 0x1b5   :  { %1079 = vmatpush.msra.mxu3 %v1046_v16 }
 0x1b7   :  { %1080 = vmatpush.msra.mxu3 %v1045_v5 }
 0x1b8   :  { %1037 = vmatmul.f32.gmra.mxu2 %v705_v40 }
 0x1c1   :  { %v775_v59 = vpop.f32.mrf.mxu0 }
 0x1c2   :  { %v776_v8 = vadd.f32 %v1197_v4, %v775_v59 }
 0x1c9   :  { %v778_v2 = vpop.f32.mrf.mxu0 }
 0x1ca   :  { %v779_v17 = vadd.f32 %v1197_v4, %v778_v2 }
 0x1d1   :  { %v781_v11 = vpop.f32.mrf.mxu0 }
 0x1d2   :  { %v782_v26 = vadd.f32 %v1197_v4, %v781_v11 }
 0x1d9   :  { %v784_v22 = vpop.f32.mrf.mxu0 }
 0x1da   :  { %v785_v30 = vadd.f32 %v1197_v4, %v784_v22 }
 0x1df   :  { %v804_v61 = vpop.f32.mrf.mxu1 }
 0x1e0   :  { %v805_v13 = vadd.f32 %v804_v61, %v776_v8 }
 0x1e1   :  { %v971_v29 = vpop.f32.mrf.mxu0 }
 0x1e2   :  { %v972_v41 = vadd.f32 %v1198_v31, %v971_v29 }
 0x1e7   :  { %v807_v53 = vpop.f32.mrf.mxu1 }
 0x1e8   :  { %v808_v18 = vadd.f32 %v807_v53, %v779_v17 }
 0x1e9   :  { %v974_v42 = vpop.f32.mrf.mxu0 }
 0x1ea   :  { %v975_v46 = vadd.f32 %v1198_v31, %v974_v42 }
 0x1ef   :  { %v810_v15 = vpop.f32.mrf.mxu1 }
 0x1f0   :  { %v811_v27 = vadd.f32 %v810_v15, %v782_v26 }
 0x1f1   :  { %v977_v48 = vpop.f32.mrf.mxu0 }
 0x1f2   :  { %v978_v55 = vadd.f32 %v1198_v31, %v977_v48 }
 0x1f7   :  { %v813_v25 = vpop.f32.mrf.mxu1 }
 0x1f8   :  { %v814_v35 = vadd.f32 %v813_v25, %v785_v30 }
 0x1f9   :  { %v980_v57 = vpop.f32.mrf.mxu0 }
 0x1fa   :  { %v981_v60 = vadd.f32 %v1198_v31, %v980_v57 }
 0x1ff   :  { %v1000_v32 = vpop.f32.mrf.mxu1 }
 0x200   :  { %v1001_v33 = vadd.f32 %v1000_v32, %v972_v41 }
 0x203   :  { %v833_v12 = vpop.f32.mrf.mxu2 }
 0x204   :  { %v834_v14 = vadd.f32 %v833_v12, %v805_v13  ;;  %v1094_v12 = vlaneseq }
 0x206   :  { %v845_v3 = vmax.f32 %v834_v14, 0.0  ;;  %v1095_v15 = vand.u32 127, %v1094_v12 }
 0x207   :  { %v1003_v43 = vpop.f32.mrf.mxu1 }
 0x208   :  { %885 = vmatmul.f32.vlgmr.msrb.gmra.mxu3 %v845_v3  ;;  %v1004_v47 = vadd.f32 %v1003_v43, %v975_v46  ;;  %vm1096_vm0 = vcmp.lt.s32.totalorder %v1095_v15, 56 }
 0x20b   :  { %v836_v20 = vpop.f32.mrf.mxu2 }
 0x20c   :  { %v837_v21 = vadd.f32 %v836_v20, %v808_v18 }
 0x20e   :  { %v846_v23 = vmax.f32 %v837_v21, 0.0 }
 0x20f   :  { %v1006_v51 = vpop.f32.mrf.mxu1 }
 0x210   :  { %888 = vmatmul.f32.gmra.mxu3 %v846_v23  ;;  %v1007_v34 = vadd.f32 %v1006_v51, %v978_v55 }
 0x213   :  { %v839_v19 = vpop.f32.mrf.mxu2 }
 0x214   :  { %v840_v24 = vadd.f32 %v839_v19, %v811_v27 }
 0x216   :  { %v847_v28 = vmax.f32 %v840_v24, 0.0 }
 0x217   :  { %v1009_v59 = vpop.f32.mrf.mxu1 }
 0x218   :  { %891 = vmatmul.f32.gmra.mxu3 %v847_v28  ;;  %v1010_v61 = vadd.f32 %v1009_v59, %v981_v60 }
 0x21b   :  { %v842_v36 = vpop.f32.mrf.mxu2 }
 0x21c   :  { %v843_v37 = vadd.f32 %v842_v36, %v814_v35 }
 0x21e   :  { %v848_v40 = vmax.f32 %v843_v37, 0.0 }
 0x220   :  { %894 = vmatmul.f32.gmra.mxu3 %v848_v40 }
 0x223   :  { %v1029_v44 = vpop.f32.mrf.mxu2 }
 0x224   :  { %v1030_v38 = vadd.f32 %v1029_v44, %v1001_v33 }
 0x226   :  { %v1041_v45 = vmax.f32 %v1030_v38, 0.0 }
 0x228   :  { %1081 = vmatmul.f32.vlgmr.msra.gmra.mxu3 %v1041_v45 }
 0x22b   :  { %v1032_v49 = vpop.f32.mrf.mxu2 }
 0x22c   :  { %v1033_v50 = vadd.f32 %v1032_v49, %v1004_v47 }
 0x22e   :  { %v1042_v54 = vmax.f32 %v1033_v50, 0.0 }
 0x230   :  { %1084 = vmatmul.f32.gmra.mxu3 %v1042_v54 }
 0x233   :  { %v1035_v39 = vpop.f32.mrf.mxu2 }
 0x234   :  { %v1036_v56 = vadd.f32 %v1035_v39, %v1007_v34 }
 0x236   :  { %v1043_v58 = vmax.f32 %v1036_v56, 0.0 }
 0x238   :  { %1087 = vmatmul.f32.gmra.mxu3 %v1043_v58 }
 0x23b   :  { %v1038_v62 = vpop.f32.mrf.mxu2 }
 0x23c   :  { %v1039_v63 = vadd.f32 %v1038_v62, %v1010_v61 }
 0x23e   :  { %v1044_v0 = vmax.f32 %v1039_v63, 0.0 }
 0x240   :  { %1090 = vmatmul.f32.gmra.mxu3 %v1044_v0 }
 0x28b   :  { %v886_v2 = vpop.f32.mrf.mxu3 }
 0x28c   :  { %v887_v52 = vadd.f32 %v1199_v1, %v886_v2 }
 0x28e   :  { %898 = vst [vmem:[%s1779_s13] sm:$0xff] %v887_v52 }
 0x293   :  { %v889_v53 = vpop.f32.mrf.mxu3 }
 0x294   :  { %v890_v4 = vadd.f32 %v1199_v1, %v889_v53 }
 0x296   :  { %899 = vst [vmem:[%s1779_s13 + $0x10] sm:$0xff] %v890_v4 }
 0x29b   :  { %v892_v6 = vpop.f32.mrf.mxu3 }
 0x29c   :  { %v893_v7 = vadd.f32 %v1199_v1, %v892_v6 }
 0x29e   :  { %900 = vst [vmem:[%s1779_s13 + $0x20] sm:$0xff] %v893_v7 }
 0x2a3   :  { %v895_v8 = vpop.f32.mrf.mxu3 }
 0x2a4   :  { %v896_v9 = vadd.f32 %v1199_v1, %v895_v8 }
 0x2a6   :  { %901 = vst [vmem:[%s1779_s13 + $0x30] sm:$0xff] %v896_v9 }
 0x2ab   :  { %v1082_v13 = vpop.f32.mrf.mxu3 }
 0x2ac   :  { %v1083_v11 = vadd.f32 %v1200_v10, %v1082_v13 }
 0x2ae   :  { %v1097_v14 = vmul.f32 1.442695, %v1083_v11 }
 0x2b0   :  { %1201 = vpow2.f32 %v1097_v14 }
 0x2b3   :  { %v1085_v16 = vpop.f32.mrf.mxu3 }
 0x2b4   :  { %v1086_v3 = vadd.f32 %v1200_v10, %v1085_v16 }
 0x2b6   :  { %v1202_v5 = vpop.eup %1201  ;;  %v1099_v17 = vmul.f32 1.442695, %v1086_v3 }
 0x2b7   :  { %v1105_v18 = vsel %vm1096_vm0, %v1202_v5, 0.0 }
 0x2b8   :  { %1203 = vpow2.f32 %v1099_v17  ;;  %1109 = vadd.xlane.f32.xlu0 %v1105_v18 }
 0x2bb   :  { %v1088_v20 = vpop.f32.mrf.mxu3 }
 0x2bc   :  { %v1089_v21 = vadd.f32 %v1200_v10, %v1088_v20 }
 0x2be   :  { %v1204_v22 = vpop.eup %1203  ;;  %v1101_v23 = vmul.f32 1.442695, %v1089_v21 }
 0x2bf   :  { %v1106_v25 = vsel %vm1096_vm0, %v1204_v22, 0.0 }
 0x2c0   :  { %1205 = vpow2.f32 %v1101_v23  ;;  %1111 = vadd.xlane.f32.xlu0 %v1106_v25 }
 0x2c3   :  { %v1091_v26 = vpop.f32.mrf.mxu3 }
 0x2c4   :  { %v1092_v27 = vadd.f32 %v1200_v10, %v1091_v26 }
 0x2c6   :  { %v1206_v19 = vpop.eup %1205  ;;  %v1103_v24 = vmul.f32 1.442695, %v1092_v27 }
 0x2c7   :  { %v1745_v28 = vsel %vm1096_vm0, %v1206_v19, 0.0 }
 0x2c8   :  { %1207 = vpow2.f32 %v1103_v24  ;;  %1113 = vadd.xlane.f32.xlu1 %v1745_v28 }
 0x2ce   :  { %v1208_v29 = vpop.eup %1207 }
 0x2cf   :  { %v1749_v30 = vsel %vm1096_vm0, %v1208_v29, 0.0 }
 0x2d0   :  { %1115 = vadd.xlane.f32.xlu1 %v1749_v30 }
 0x32b   :  { %v1110_v32 = vpop.xlane.xlu0 %1109 }
 0x32c   :  { %1209 = vrcp.f32 %v1110_v32  ;;  %v1128_v40 = vand.u32 2147483648, %v1110_v32  ;;  %v1126_v42 = vand.u32 2147483647, %v1110_v32  ;;  %vm1122_vm2 = vweird.f32 %v1110_v32 }
 0x32e   :  { %v1129_v44 = vor.u32 1.1754944e-38, %v1128_v40  ;;  %vm1127_vm4 = vcmp.eq.f32.partialorder %v1126_v42, 8.507059e+37 }
 0x332   :  { %v1210_v35 = vpop.eup %1209 }
 0x333   :  { %v1118_v36 = vmul.f32 %v1210_v35, %v1110_v32  ;;  %v1112_v31 = vpop.xlane.xlu0 %1111  ;;  %vm1123_vm1 = vweird.f32 %v1210_v35 }
 0x334   :  { %1211 = vrcp.f32 %v1112_v31  ;;  %vm1124_vm3 = vmor %vm1122_vm2, %vm1123_vm1  ;;  %v1143_v50 = vand.u32 2147483648, %v1112_v31  ;;  %v1141_v54 = vand.u32 2147483647, %v1112_v31  ;;  %vm1137_vm6 = vweird.f32 %v1112_v31 }
 0x335   :  { %v1119_v37 = vsub.f32 1.0, %v1118_v36 }
 0x336   :  { %v1144_v39 = vor.u32 1.1754944e-38, %v1143_v50  ;;  %vm1142_vm8 = vcmp.eq.f32.partialorder %v1141_v54, 8.507059e+37 }
 0x337   :  { %v1120_v41 = vmul.f32 %v1210_v35, %v1119_v37 }
 0x339   :  { %v1121_v33 = vadd.f32 %v1210_v35, %v1120_v41 }
 0x33a   :  { %v1212_v43 = vpop.eup %1211 }
 0x33b   :  { %v1125_v38 = vsel %vm1124_vm3, %v1210_v35, %v1121_v33  ;;  %v1133_v45 = vmul.f32 %v1212_v43, %v1112_v31  ;;  %v1114_v46 = vpop.xlane.xlu1 %1113  ;;  %vm1138_vm5 = vweird.f32 %v1212_v43 }
 0x33c   :  { %v1130_v47 = vsel %vm1127_vm4, %v1129_v44, %v1125_v38  ;;  %1213 = vrcp.f32 %v1114_v46  ;;  %vm1139_vm7 = vmor %vm1137_vm6, %vm1138_vm5  ;;  %v1158_v62 = vand.u32 2147483648, %v1114_v46  ;;  %v1156_v0 = vand.u32 2147483647, %v1114_v46 }
 0x33d   :  { %v1131_v48 = vmul.f32 %v1130_v47, %v1105_v18  ;;  %v1134_v49 = vsub.f32 1.0, %v1133_v45  ;;  %vm1152_vm10 = vweird.f32 %v1114_v46 }
 0x33e   :  { %v1159_v52 = vor.u32 1.1754944e-38, %v1158_v62  ;;  %vm1157_vm12 = vcmp.eq.f32.partialorder %v1156_v0, 8.507059e+37 }
 0x33f   :  { %1177 = vst [vmem:[%s1779_s13 + $0x8] sm:$0xff] %v1131_v48  ;;  %v1135_v51 = vmul.f32 %v1212_v43, %v1134_v49 }
 0x341   :  { %v1136_v55 = vadd.f32 %v1212_v43, %v1135_v51 }
 0x342   :  { %v1214_v34 = vpop.eup %1213 }
 0x343   :  { %v1140_v56 = vsel %vm1139_vm7, %v1212_v43, %v1136_v55  ;;  %v1148_v57 = vmul.f32 %v1214_v34, %v1114_v46  ;;  %v1116_v58 = vpop.xlane.xlu1 %1115  ;;  %vm1153_vm9 = vweird.f32 %v1214_v34 }
 0x344   :  { %v1145_v59 = vsel %vm1142_vm8, %v1144_v39, %v1140_v56  ;;  %1215 = vrcp.f32 %v1116_v58  ;;  %vm1154_vm11 = vmor %vm1152_vm10, %vm1153_vm9  ;;  %v1173_v9 = vand.u32 2147483648, %v1116_v58  ;;  %v1171_v13 = vand.u32 2147483647, %v1116_v58 }
 0x345   :  { %v1146_v60 = vmul.f32 %v1145_v59, %v1106_v25  ;;  %v1149_v61 = vsub.f32 1.0, %v1148_v57  ;;  %vm1167_vm14 = vweird.f32 %v1116_v58 }
 0x346   :  { %v1174_v12 = vor.u32 1.1754944e-38, %v1173_v9  ;;  %vm1172_vm0 = vcmp.eq.f32.partialorder %v1171_v13, 8.507059e+37 }
 0x347   :  { %1178 = vst [vmem:[%s1779_s13 + $0x18] sm:$0xff] %v1146_v60  ;;  %v1150_v63 = vmul.f32 %v1214_v34, %v1149_v61 }
 0x349   :  { %v1151_v1 = vadd.f32 %v1214_v34, %v1150_v63 }
 0x34a   :  { %v1216_v2 = vpop.eup %1215 }
 0x34b   :  { %v1155_v53 = vsel %vm1154_vm11, %v1214_v34, %v1151_v1  ;;  %v1163_v4 = vmul.f32 %v1216_v2, %v1116_v58  ;;  %vm1168_vm13 = vweird.f32 %v1216_v2 }
 0x34c   :  { %v1160_v6 = vsel %vm1157_vm12, %v1159_v52, %v1155_v53  ;;  %vm1169_vm15 = vmor %vm1167_vm14, %vm1168_vm13 }
 0x34d   :  { %v1161_v7 = vmul.f32 %v1160_v6, %v1745_v28  ;;  %v1164_v8 = vsub.f32 1.0, %v1163_v4 }
 0x34f   :  { %1179 = vst [vmem:[%s1779_s13 + $0x28] sm:$0xff] %v1161_v7  ;;  %v1165_v10 = vmul.f32 %v1216_v2, %v1164_v8 }
 0x351   :  { %v1166_v11 = vadd.f32 %v1216_v2, %v1165_v10 }
 0x353   :  { %v1170_v14 = vsel %vm1169_vm15, %v1216_v2, %v1166_v11 }
 0x354   :  { %v1175_v15 = vsel %vm1172_vm0, %v1174_v12, %v1170_v14 }
 0x355   :  { %v1176_v16 = vmul.f32 %v1175_v15, %v1749_v30 }
 0x357   :  { %1180 = vst [vmem:[%s1779_s13 + $0x38] sm:$0xff] %v1176_v16 }
 0x358   :  { %1185 = vsyncpa [#allocation3], 1 }
 0x359   :  { %1186 = vsyncpa [#allocation5], 1 }
 0x35a   :  { %1187 = vsyncpa [#allocation8], 1 }

</bundles_post_ra>
